<compile_context>
chip_gen: v7x
topology: tpu7x:2x2x1
jax: 0.10.0
libtpu: 0.0.40
codegen_flags: <defaults>
</compile_context>

<pallas_src>
import jax
import jax.numpy as jnp
from jax.experimental import pallas as pl
from jax.experimental.pallas import tpu as pltpu

DIST_LOSS_WEIGHT = 25.0
ANGLE_LOSS_WEIGHT = 50.0
PDIST_EPS = 1e-12   # clamp in pdist (matches torch default eps)
NORM_EPS = 1e-12    # F.normalize clamp_min eps (applied to the norm)


# ----------------------------------------------------------------------------
# Pallas kernel
# ----------------------------------------------------------------------------
def rkd_loss_kernel(fs_ref, ft_ref, out_ref, stack_ref, diag_s_ref, diag_t_ref):
    n = fs_ref.shape[0]
    n_al = stack_ref.shape[0] // 4          # 8-aligned row stride of the stack
    inv_n2 = jnp.float32(1.0 / float(n * n))
    inv_n3 = jnp.float32(1.0 / float(n * n * n))

    fs = fs_ref[...]
    ft = ft_ref[...]

    # --- two separate MXU grams (no unused cross block, no concat copy) ------
    gs = jax.lax.dot_general(fs, fs, (((1,), (1,)), ((), ())),
                             preferred_element_type=jnp.float32)   # (N,N) f32
    gt = jax.lax.dot_general(ft, ft, (((1,), (1,)), ((), ())),
                             preferred_element_type=jnp.float32)   # (N,N) f32

    row = jax.lax.broadcasted_iota(jnp.int32, (n, n), 0)
    col = jax.lax.broadcasted_iota(jnp.int32, (n, n), 1)
    eye = row == col

    def dist_and_inv(g):
        # diagonal extracted once (single masked select, reduced twice)
        gd = jnp.where(eye, g, 0.0)
        e_col = jnp.sum(gd, axis=1, keepdims=True)   # (N,1)  G[i,i]
        e_row = jnp.sum(gd, axis=0, keepdims=True)   # (1,N)  G[j,j]
        sq = e_col + e_row - 2.0 * g                 # ||x_i - x_j||^2
        # torch pdist: clamp(min=eps).sqrt(), zero the diagonal
        dist = jnp.where(eye, 0.0, jnp.sqrt(jnp.maximum(sq, PDIST_EPS)))
        # fused rsqrt == 1 / max(sqrt(max(sq, 0)), NORM_EPS); zero the diagonal
        inv = jnp.where(eye, 0.0,
                        jax.lax.rsqrt(jnp.maximum(sq, NORM_EPS * NORM_EPS)))
        return dist, inv, e_col

    d_s, inv_s, esq_s = dist_and_inv(gs)
    d_t, inv_t, esq_t = dist_and_inv(gt)

    # --- RKD distance loss ----------------------------------------------------
    # off-diagonal clamped distances are strictly positive, diagonal is exactly
    # zero -> positive-mean count is the compile-time constant n^2 - n.
    cnt = jnp.float32(float(n * n - n))

    def mean_scale(dm):
        return dm * (cnt / jnp.maximum(jnp.sum(dm), jnp.float32(1e-30)))

    diff_d = mean_scale(d_s) - mean_scale(d_t)
    ad = jnp.abs(diff_d)
    huber_d = jnp.where(ad < 1.0, 0.5 * diff_d * diff_d, ad - 0.5)
    loss_distance = jnp.sum(huber_d) * inv_n2

    # --- stage the matrices for cheap per-i extraction in the angle loop -----
    if n_al != n:   # zero padding rows so the one-hot matmul reads no garbage
        stack_ref[...] = jnp.zeros(stack_ref.shape, stack_ref.dtype)
    stack_ref[pl.ds(0 * n_al, n), :] = gs
    stack_ref[pl.ds(1 * n_al, n), :] = gt
    stack_ref[pl.ds(2 * n_al, n), :] = inv_s
    stack_ref[pl.ds(3 * n_al, n), :] = inv_t
    diag_s_ref[...] = esq_s
    diag_t_ref[...] = esq_t

    # --- RKD angle loss (fused over i, VMEM stays O(N^2)) ---------------------
    # angle[i,j,k] = (G[j,k] - G[i,j] - G[i,k] + G[i,i]) * inv[i,j] * inv[i,k]
    def angle_step(i, acc):
        # (1, N) row forms: direct dynamic-sublane loads
        gs_row = stack_ref[pl.ds(0 * n_al + i, 1), :]    # Gs[i, k]
        gt_row = stack_ref[pl.ds(1 * n_al + i, 1), :]    # Gt[i, k]
        ivs_row = stack_ref[pl.ds(2 * n_al + i, 1), :]   # inv_s[i, k]
        ivt_row = stack_ref[pl.ds(3 * n_al + i, 1), :]   # inv_t[i, k]

        # (N, 1) column forms for all four symmetric matrices with ONE small
        # one-hot matmul on the otherwise idle MXU slot.
        onehot = (jax.lax.broadcasted_iota(jnp.int32, (n, 1), 0) == i
                  ).astype(jnp.float32)
        cols = jnp.dot(stack_ref[...], onehot,
                       preferred_element_type=jnp.float32)          # (4*n_al,1)
        gs_col = cols[0 * n_al:0 * n_al + n, :]          # Gs[i, j]
        gt_col = cols[1 * n_al:1 * n_al + n, :]          # Gt[i, j]
        ivs_col = cols[2 * n_al:2 * n_al + n, :]         # inv_s[i, j]
        ivt_col = cols[3 * n_al:3 * n_al + n, :]         # inv_t[i, j]

        gii_s = diag_s_ref[pl.ds(i, 1), :]               # (1,1) Gs[i,i]
        gii_t = diag_t_ref[pl.ds(i, 1), :]               # (1,1) Gt[i,i]

        s_slc = (gs - gs_col - gs_row + gii_s) * ivs_col * ivs_row
        t_slc = (gt - gt_col - gt_row + gii_t) * ivt_col * ivt_row
        diff = s_slc - t_slc
        a = jnp.abs(diff)
        return acc + jnp.where(a < 1.0, 0.5 * diff * diff, a - 0.5)

    if n <= 16:
        unroll = n
    elif n % 8 == 0:
        unroll = 8
    elif n % 4 == 0:
        unroll = 4
    else:
        unroll = 2

    angle_acc = jax.lax.fori_loop(
        0, n, angle_step, jnp.zeros((n, n), jnp.float32), unroll=unroll
    )
    loss_angle = jnp.sum(angle_acc) * inv_n3

    loss = DIST_LOSS_WEIGHT * loss_distance + ANGLE_LOSS_WEIGHT * loss_angle
    out_ref[...] = jnp.broadcast_to(loss, (1, 1)).astype(jnp.float32)


# ----------------------------------------------------------------------------
# Wrapper
# ----------------------------------------------------------------------------
def rkd_loss(feature_student, feature_teacher):
    """Pallas-backed RKDLoss forward. Inputs: (N, D) arrays. Returns f32 scalar."""
    assert feature_student.shape == feature_teacher.shape
    assert feature_student.ndim == 2
    n, d = feature_student.shape
    n_al = ((n + 7) // 8) * 8

    # Lane-dense features: zero-pad D to a multiple of 128 (distances and inner
    # products of pairwise differences are unchanged by zero padding).
    d_pad = ((d + 127) // 128) * 128
    if d_pad != d:
        pw = ((0, 0), (0, d_pad - d))
        feature_student = jnp.pad(feature_student, pw)
        feature_teacher = jnp.pad(feature_teacher, pw)

    itemsize = jnp.dtype(feature_student.dtype).itemsize

    # Working set: 2 feature tiles (double-buffered), the (4*N_al, N) f32 stack
    # scratch, two (N,1) diag scratches and ~a dozen N x N f32 temporaries.
    vmem_est = (
        2 * n * d_pad * itemsize * 2
        + 4 * (4 * n_al) * n
        + 4 * n * n * 14
        + 2 * 4 * n
    )
    # Generation-aware VMEM cap (v5e/v6e: 128 MiB physical; v7x: 64 MiB).
    try:
        vmem_cap = int(pltpu.get_tpu_info().vmem_capacity_bytes)
    except Exception:
        vmem_cap = 64 << 20
    vmem_limit = int(min(max(2 * vmem_est + (4 << 20), 8 << 20),
                         int(vmem_cap * 0.75)))

    flops = int(
        2 * 2 * n * n * d_pad            # two grams
        + n * 8 * n_al * n               # per-i one-hot extraction matmul
        + 36 * n ** 3 + 80 * n ** 2      # angle VPU work + distance path
    )
    cost = pl.CostEstimate(
        flops=flops,
        transcendentals=int(4 * n * n),  # 2x sqrt + 2x rsqrt on the N^2 path
        bytes_accessed=int(2 * n * d_pad * itemsize + 4),
    )

    out = pl.pallas_call(
        rkd_loss_kernel,
        out_shape=jax.ShapeDtypeStruct((1, 1), jnp.float32),
        in_specs=[
            pl.BlockSpec((n, d_pad), lambda: (0, 0)),
            pl.BlockSpec((n, d_pad), lambda: (0, 0)),
        ],
        out_specs=pl.BlockSpec((1, 1), lambda: (0, 0)),
        scratch_shapes=[
            pltpu.VMEM((4 * n_al, n), jnp.float32),  # [gs; gt; inv_s; inv_t]
            pltpu.VMEM((n, 1), jnp.float32),         # diag(gs) = ||x_i||^2
            pltpu.VMEM((n, 1), jnp.float32),         # diag(gt)
        ],
        compiler_params=pltpu.CompilerParams(vmem_limit_bytes=vmem_limit),
        cost_estimate=cost,
    )(feature_student, feature_teacher)
    return out[0, 0]


# ----------------------------------------------------------------------------
# Plain-JAX reference (mirrors the PyTorch module) for sanity checking
# ----------------------------------------------------------------------------
def _pdist_ref(x):
    n = x.shape[0]
    e_sq = jnp.sum(x * x, axis=1)
    prod = jnp.dot(x, x.T, preferred_element_type=jnp.float32)
    res = e_sq[:, None] + e_sq[None, :] - 2.0 * prod
    res = jnp.sqrt(jnp.maximum(res, PDIST_EPS))
    row = jax.lax.broadcasted_iota(jnp.int32, (n, n), 0)
    col = jax.lax.broadcasted_iota(jnp.int32, (n, n), 1)
    return jnp.where(row == col, 0.0, res)


def _positive_mean_ref(d):
    pos = (d > 0.0).astype(jnp.float32)
    return jnp.sum(jnp.where(d > 0.0, d, 0.0)) / jnp.sum(pos)


def _smooth_l1_mean_ref(a, b):
    diff = a - b
    ad = jnp.abs(diff)
    elem = jnp.where(ad < 1.0, 0.5 * diff * diff, ad - 0.5)
    return jnp.mean(elem)


def _angle_matrix_ref(x):
    d = x[None, :, :] - x[:, None, :]                          # (N, N, D)
    nrm = jnp.sqrt(jnp.sum(d * d, axis=2, keepdims=True))
    nd = d / jnp.maximum(nrm, NORM_EPS)
    return jnp.einsum("ijd,ikd->ijk", nd, nd, preferred_element_type=jnp.float32)


def rkd_loss_ref(fs, ft):
    fs = fs.astype(jnp.float32)
    ft = ft.astype(jnp.float32)
    t_dist = _pdist_ref(ft)
    t_dist = t_dist / _positive_mean_ref(t_dist)
    s_dist = _pdist_ref(fs)
    s_dist = s_dist / _positive_mean_ref(s_dist)
    loss_distance = _smooth_l1_mean_ref(s_dist, t_dist)
    loss_angle = _smooth_l1_mean_ref(_angle_matrix_ref(fs), _angle_matrix_ref(ft))
    return DIST_LOSS_WEIGHT * loss_distance + ANGLE_LOSS_WEIGHT * loss_angle


if __name__ == "__main__":
    # RKDLoss has no learnable parameters; only the two loss weights (25, 50).
    key = jax.random.PRNGKey(0)
    k_s, k_t = jax.random.split(key)
    N, D = 8, 32  # small shapes: batch of 8 embeddings, hidden dim 32
    feature_student = jax.random.normal(k_s, (N, D), dtype=jnp.float32)
    feature_teacher = jax.random.normal(k_t, (N, D), dtype=jnp.float32)

    loss = jax.jit(rkd_loss)(feature_student, feature_teacher)
    loss = jax.block_until_ready(loss)

    ref = rkd_loss_ref(feature_student, feature_teacher)
    assert jnp.isfinite(loss), "kernel produced non-finite loss"
    assert jnp.allclose(loss, ref, rtol=1e-3, atol=1e-5), (loss, ref)

    print("KERNEL_OK")
</pallas_src>

<mosaic_0001>
module attributes {stable_mosaic.version = 11 : i64} {
  func.func @rkd_loss_kernel(%arg0: memref<8x128xf32, #tpu.memory_space<vmem>>, %arg1: memref<8x128xf32, #tpu.memory_space<vmem>>, %arg2: memref<1x1xf32, #tpu.memory_space<vmem>>, %arg3: memref<32x8xf32, #tpu.memory_space<vmem>>, %arg4: memref<8x1xf32, #tpu.memory_space<vmem>>, %arg5: memref<8x1xf32, #tpu.memory_space<vmem>>) attributes {dimension_semantics = [], scalar_prefetch = 0 : i64, scratch_operands = 3 : i64, tpu.core_type = #tpu.core_type<tc>} {
    %c0 = arith.constant 0 : index
    %c0_0 = arith.constant 0 : index
    %0 = vector.load %arg0[%c0, %c0_0] : memref<8x128xf32, #tpu.memory_space<vmem>>, vector<8x128xf32>
    %c0_1 = arith.constant 0 : index
    %c0_2 = arith.constant 0 : index
    %1 = vector.load %arg1[%c0_1, %c0_2] : memref<8x128xf32, #tpu.memory_space<vmem>>, vector<8x128xf32>
    %cst = arith.constant dense<0.000000e+00> : vector<8x8xf32>
    %2 = tpu.matmul %0, %0, %cst {dimension_numbers = #tpu.dot_dimension_numbers<[1], [1], [0], [0], [0, 0, 1, 0], [], []>} : vector<8x128xf32>, vector<8x128xf32>, vector<8x8xf32> -> vector<8x8xf32>
    %cst_3 = arith.constant dense<0.000000e+00> : vector<8x8xf32>
    %3 = tpu.matmul %1, %1, %cst_3 {dimension_numbers = #tpu.dot_dimension_numbers<[1], [1], [0], [0], [0, 0, 1, 0], [], []>} : vector<8x128xf32>, vector<8x128xf32>, vector<8x8xf32> -> vector<8x8xf32>
    %4 = tpu.iota {dimensions = array<i32: 0>} : vector<8x8xi32>
    %5 = tpu.iota {dimensions = array<i32: 1>} : vector<8x8xi32>
    %6 = arith.cmpi eq, %4, %5 : vector<8x8xi32>
    %cst_4 = arith.constant 0.000000e+00 : f32
    %7 = vector.broadcast %cst_4 : f32 to vector<8x8xf32>
    %8 = arith.select %6, %2, %7 : vector<8x8xi1>, vector<8x8xf32>
    %cst_5 = arith.constant dense<0.000000e+00> : vector<8xf32>
    %9 = vector.multi_reduction <add>, %8, %cst_5 [1] : vector<8x8xf32> to vector<8xf32>
    %10 = vector.shape_cast %9 : vector<8xf32> to vector<8x1xf32>
    %cst_6 = arith.constant dense<0.000000e+00> : vector<8xf32>
    %11 = vector.multi_reduction <add>, %8, %cst_6 [0] : vector<8x8xf32> to vector<8xf32>
    %12 = vector.shape_cast %11 : vector<8xf32> to vector<1x8xf32>
    %13 = vector.broadcast %10 : vector<8x1xf32> to vector<8x8xf32>
    %14 = vector.broadcast %12 : vector<1x8xf32> to vector<8x8xf32>
    %15 = arith.addf %13, %14 : vector<8x8xf32>
    %cst_7 = arith.constant 2.000000e+00 : f32
    %16 = vector.broadcast %cst_7 : f32 to vector<8x8xf32>
    %17 = arith.mulf %16, %2 : vector<8x8xf32>
    %18 = arith.subf %15, %17 : vector<8x8xf32>
    %cst_8 = arith.constant 9.99999996E-13 : f32
    %19 = vector.broadcast %cst_8 : f32 to vector<8x8xf32>
    %20 = arith.maximumf %18, %19 : vector<8x8xf32>
    %21 = math.sqrt %20 : vector<8x8xf32>
    %cst_9 = arith.constant 0.000000e+00 : f32
    %22 = vector.broadcast %cst_9 : f32 to vector<8x8xf32>
    %23 = arith.select %6, %22, %21 : vector<8x8xi1>, vector<8x8xf32>
    %cst_10 = arith.constant 1.000000e-24 : f32
    %24 = vector.broadcast %cst_10 : f32 to vector<8x8xf32>
    %25 = arith.maximumf %18, %24 : vector<8x8xf32>
    %26 = math.rsqrt %25 : vector<8x8xf32>
    %cst_11 = arith.constant 0.000000e+00 : f32
    %27 = vector.broadcast %cst_11 : f32 to vector<8x8xf32>
    %28 = arith.select %6, %27, %26 : vector<8x8xi1>, vector<8x8xf32>
    %cst_12 = arith.constant 0.000000e+00 : f32
    %29 = vector.broadcast %cst_12 : f32 to vector<8x8xf32>
    %30 = arith.select %6, %3, %29 : vector<8x8xi1>, vector<8x8xf32>
    %cst_13 = arith.constant dense<0.000000e+00> : vector<8xf32>
    %31 = vector.multi_reduction <add>, %30, %cst_13 [1] : vector<8x8xf32> to vector<8xf32>
    %32 = vector.shape_cast %31 : vector<8xf32> to vector<8x1xf32>
    %cst_14 = arith.constant dense<0.000000e+00> : vector<8xf32>
    %33 = vector.multi_reduction <add>, %30, %cst_14 [0] : vector<8x8xf32> to vector<8xf32>
    %34 = vector.shape_cast %33 : vector<8xf32> to vector<1x8xf32>
    %35 = vector.broadcast %32 : vector<8x1xf32> to vector<8x8xf32>
    %36 = vector.broadcast %34 : vector<1x8xf32> to vector<8x8xf32>
    %37 = arith.addf %35, %36 : vector<8x8xf32>
    %cst_15 = arith.constant 2.000000e+00 : f32
    %38 = vector.broadcast %cst_15 : f32 to vector<8x8xf32>
    %39 = arith.mulf %38, %3 : vector<8x8xf32>
    %40 = arith.subf %37, %39 : vector<8x8xf32>
    %cst_16 = arith.constant 9.99999996E-13 : f32
    %41 = vector.broadcast %cst_16 : f32 to vector<8x8xf32>
    %42 = arith.maximumf %40, %41 : vector<8x8xf32>
    %43 = math.sqrt %42 : vector<8x8xf32>
    %cst_17 = arith.constant 0.000000e+00 : f32
    %44 = vector.broadcast %cst_17 : f32 to vector<8x8xf32>
    %45 = arith.select %6, %44, %43 : vector<8x8xi1>, vector<8x8xf32>
    %cst_18 = arith.constant 1.000000e-24 : f32
    %46 = vector.broadcast %cst_18 : f32 to vector<8x8xf32>
    %47 = arith.maximumf %40, %46 : vector<8x8xf32>
    %48 = math.rsqrt %47 : vector<8x8xf32>
    %cst_19 = arith.constant 0.000000e+00 : f32
    %49 = vector.broadcast %cst_19 : f32 to vector<8x8xf32>
    %50 = arith.select %6, %49, %48 : vector<8x8xi1>, vector<8x8xf32>
    %51 = vector.shape_cast %23 : vector<8x8xf32> to vector<1x8x8xf32>
    %cst_20 = arith.constant dense<0.000000e+00> : vector<1xf32>
    %52 = vector.multi_reduction <add>, %51, %cst_20 [1, 2] : vector<1x8x8xf32> to vector<1xf32>
    %53 = vector.shape_cast %52 : vector<1xf32> to vector<1x1x1xf32>
    %54 = vector.extract %53[0, 0, 0] : f32 from vector<1x1x1xf32>
    %cst_21 = arith.constant 1.000000e-30 : f32
    %55 = arith.maximumf %54, %cst_21 : f32
    %cst_22 = arith.constant 5.600000e+01 : f32
    %56 = arith.divf %cst_22, %55 : f32
    %57 = vector.broadcast %56 : f32 to vector<8x8xf32>
    %58 = arith.mulf %23, %57 : vector<8x8xf32>
    %59 = vector.shape_cast %45 : vector<8x8xf32> to vector<1x8x8xf32>
    %cst_23 = arith.constant dense<0.000000e+00> : vector<1xf32>
    %60 = vector.multi_reduction <add>, %59, %cst_23 [1, 2] : vector<1x8x8xf32> to vector<1xf32>
    %61 = vector.shape_cast %60 : vector<1xf32> to vector<1x1x1xf32>
    %62 = vector.extract %61[0, 0, 0] : f32 from vector<1x1x1xf32>
    %cst_24 = arith.constant 1.000000e-30 : f32
    %63 = arith.maximumf %62, %cst_24 : f32
    %cst_25 = arith.constant 5.600000e+01 : f32
    %64 = arith.divf %cst_25, %63 : f32
    %65 = vector.broadcast %64 : f32 to vector<8x8xf32>
    %66 = arith.mulf %45, %65 : vector<8x8xf32>
    %67 = arith.subf %58, %66 : vector<8x8xf32>
    %68 = math.absf %67 : vector<8x8xf32>
    %cst_26 = arith.constant 1.000000e+00 : f32
    %69 = vector.broadcast %cst_26 : f32 to vector<8x8xf32>
    %70 = arith.cmpf olt, %68, %69 : vector<8x8xf32>
    %cst_27 = arith.constant 5.000000e-01 : f32
    %71 = vector.broadcast %cst_27 : f32 to vector<8x8xf32>
    %72 = arith.mulf %71, %67 : vector<8x8xf32>
    %73 = arith.mulf %72, %67 : vector<8x8xf32>
    %cst_28 = arith.constant 5.000000e-01 : f32
    %74 = vector.broadcast %cst_28 : f32 to vector<8x8xf32>
    %75 = arith.subf %68, %74 : vector<8x8xf32>
    %76 = arith.select %70, %73, %75 : vector<8x8xi1>, vector<8x8xf32>
    %77 = vector.shape_cast %76 : vector<8x8xf32> to vector<1x8x8xf32>
    %cst_29 = arith.constant dense<0.000000e+00> : vector<1xf32>
    %78 = vector.multi_reduction <add>, %77, %cst_29 [1, 2] : vector<1x8x8xf32> to vector<1xf32>
    %79 = vector.shape_cast %78 : vector<1xf32> to vector<1x1x1xf32>
    %80 = vector.extract %79[0, 0, 0] : f32 from vector<1x1x1xf32>
    %cst_30 = arith.constant 1.562500e-02 : f32
    %81 = arith.mulf %80, %cst_30 : f32
    %c0_31 = arith.constant 0 : index
    %c0_32 = arith.constant 0 : index
    %82 = vector.load %arg3[%c0_31, %c0_32] : memref<32x8xf32, #tpu.memory_space<vmem>>, vector<8x8xf32>
    tpu.vector_store %arg3[%c0_31, %c0_32], %2 {strides = array<i32>} : memref<32x8xf32, #tpu.memory_space<vmem>>, vector<8x8xf32>,
    %c8 = arith.constant 8 : index
    %c0_33 = arith.constant 0 : index
    %83 = vector.load %arg3[%c8, %c0_33] : memref<32x8xf32, #tpu.memory_space<vmem>>, vector<8x8xf32>
    tpu.vector_store %arg3[%c8, %c0_33], %3 {strides = array<i32>} : memref<32x8xf32, #tpu.memory_space<vmem>>, vector<8x8xf32>,
    %c16 = arith.constant 16 : index
    %c0_34 = arith.constant 0 : index
    %84 = vector.load %arg3[%c16, %c0_34] : memref<32x8xf32, #tpu.memory_space<vmem>>, vector<8x8xf32>
    tpu.vector_store %arg3[%c16, %c0_34], %28 {strides = array<i32>} : memref<32x8xf32, #tpu.memory_space<vmem>>, vector<8x8xf32>,
    %c24 = arith.constant 24 : index
    %c0_35 = arith.constant 0 : index
    %85 = vector.load %arg3[%c24, %c0_35] : memref<32x8xf32, #tpu.memory_space<vmem>>, vector<8x8xf32>
    tpu.vector_store %arg3[%c24, %c0_35], %50 {strides = array<i32>} : memref<32x8xf32, #tpu.memory_space<vmem>>, vector<8x8xf32>,
    %c0_36 = arith.constant 0 : index
    %c0_37 = arith.constant 0 : index
    %86 = vector.load %arg4[%c0_36, %c0_37] : memref<8x1xf32, #tpu.memory_space<vmem>>, vector<8x1xf32>
    tpu.vector_store %arg4[%c0_36, %c0_37], %10 {strides = array<i32>} : memref<8x1xf32, #tpu.memory_space<vmem>>, vector<8x1xf32>,
    %c0_38 = arith.constant 0 : index
    %c0_39 = arith.constant 0 : index
    %87 = vector.load %arg5[%c0_38, %c0_39] : memref<8x1xf32, #tpu.memory_space<vmem>>, vector<8x1xf32>
    tpu.vector_store %arg5[%c0_38, %c0_39], %32 {strides = array<i32>} : memref<8x1xf32, #tpu.memory_space<vmem>>, vector<8x1xf32>,
    %cst_40 = arith.constant 0.000000e+00 : f32
    %88 = vector.broadcast %cst_40 : f32 to vector<8x8xf32>
    %c0_i32 = arith.constant 0 : i32
    %c0_i32_41 = arith.constant 0 : i32
    %89 = arith.addi %c0_i32_41, %c0_i32 : i32
    %90 = arith.index_cast %89 : i32 to index
    %c0_42 = arith.constant 0 : index
    %91 = vector.load %arg3[%90, %c0_42] : memref<32x8xf32, #tpu.memory_space<vmem>>, vector<1x8xf32>
    %c8_i32 = arith.constant 8 : i32
    %92 = arith.addi %c8_i32, %c0_i32 : i32
    %93 = arith.index_cast %92 : i32 to index
    %c0_43 = arith.constant 0 : index
    %94 = vector.load %arg3[%93, %c0_43] : memref<32x8xf32, #tpu.memory_space<vmem>>, vector<1x8xf32>
    %c16_i32 = arith.constant 16 : i32
    %95 = arith.addi %c16_i32, %c0_i32 : i32
    %96 = arith.index_cast %95 : i32 to index
    %c0_44 = arith.constant 0 : index
    %97 = vector.load %arg3[%96, %c0_44] : memref<32x8xf32, #tpu.memory_space<vmem>>, vector<1x8xf32>
    %c24_i32 = arith.constant 24 : i32
    %98 = arith.addi %c24_i32, %c0_i32 : i32
    %99 = arith.index_cast %98 : i32 to index
    %c0_45 = arith.constant 0 : index
    %100 = vector.load %arg3[%99, %c0_45] : memref<32x8xf32, #tpu.memory_space<vmem>>, vector<1x8xf32>
    %101 = tpu.iota {dimensions = array<i32: 0>} : vector<8x1xi32>
    %102 = vector.broadcast %c0_i32 : i32 to vector<8x1xi32>
    %103 = arith.cmpi eq, %101, %102 : vector<8x1xi32>
    %104 = arith.extui %103 : vector<8x1xi1> to vector<8x1xi32>
    %105 = arith.sitofp %104 : vector<8x1xi32> to vector<8x1xf32>
    %c0_46 = arith.constant 0 : index
    %c0_47 = arith.constant 0 : index
    %106 = vector.load %arg3[%c0_46, %c0_47] : memref<32x8xf32, #tpu.memory_space<vmem>>, vector<32x8xf32>
    %cst_48 = arith.constant dense<0.000000e+00> : vector<32x1xf32>
    %107 = tpu.matmul %106, %105, %cst_48 {dimension_numbers = #tpu.dot_dimension_numbers<[1], [0], [0], [1], [0, 0, 1, 1], [], []>} : vector<32x8xf32>, vector<8x1xf32>, vector<32x1xf32> -> vector<32x1xf32>
    %108 = vector.extract_strided_slice %107 {offsets = [0, 0], sizes = [8, 1], strides = [1, 1]} : vector<32x1xf32> to vector<8x1xf32>
    %109 = vector.extract_strided_slice %107 {offsets = [8, 0], sizes = [8, 1], strides = [1, 1]} : vector<32x1xf32> to vector<8x1xf32>
    %110 = vector.extract_strided_slice %107 {offsets = [16, 0], sizes = [8, 1], strides = [1, 1]} : vector<32x1xf32> to vector<8x1xf32>
    %111 = vector.extract_strided_slice %107 {offsets = [24, 0], sizes = [8, 1], strides = [1, 1]} : vector<32x1xf32> to vector<8x1xf32>
    %112 = arith.index_cast %c0_i32 : i32 to index
    %c0_49 = arith.constant 0 : index
    %113 = vector.load %arg4[%112, %c0_49] : memref<8x1xf32, #tpu.memory_space<vmem>>, vector<1x1xf32>
    %114 = arith.index_cast %c0_i32 : i32 to index
    %c0_50 = arith.constant 0 : index
    %115 = vector.load %arg5[%114, %c0_50] : memref<8x1xf32, #tpu.memory_space<vmem>>, vector<1x1xf32>
    %116 = vector.broadcast %108 : vector<8x1xf32> to vector<8x8xf32>
    %117 = arith.subf %2, %116 : vector<8x8xf32>
    %118 = vector.broadcast %91 : vector<1x8xf32> to vector<8x8xf32>
    %119 = arith.subf %117, %118 : vector<8x8xf32>
    %120 = vector.broadcast %113 : vector<1x1xf32> to vector<8x8xf32>
    %121 = arith.addf %119, %120 : vector<8x8xf32>
    %122 = vector.broadcast %110 : vector<8x1xf32> to vector<8x8xf32>
    %123 = arith.mulf %121, %122 : vector<8x8xf32>
    %124 = vector.broadcast %97 : vector<1x8xf32> to vector<8x8xf32>
    %125 = arith.mulf %123, %124 : vector<8x8xf32>
    %126 = vector.broadcast %109 : vector<8x1xf32> to vector<8x8xf32>
    %127 = arith.subf %3, %126 : vector<8x8xf32>
    %128 = vector.broadcast %94 : vector<1x8xf32> to vector<8x8xf32>
    %129 = arith.subf %127, %128 : vector<8x8xf32>
    %130 = vector.broadcast %115 : vector<1x1xf32> to vector<8x8xf32>
    %131 = arith.addf %129, %130 : vector<8x8xf32>
    %132 = vector.broadcast %111 : vector<8x1xf32> to vector<8x8xf32>
    %133 = arith.mulf %131, %132 : vector<8x8xf32>
    %134 = vector.broadcast %100 : vector<1x8xf32> to vector<8x8xf32>
    %135 = arith.mulf %133, %134 : vector<8x8xf32>
    %136 = arith.subf %125, %135 : vector<8x8xf32>
    %137 = math.absf %136 : vector<8x8xf32>
    %cst_51 = arith.constant 1.000000e+00 : f32
    %138 = vector.broadcast %cst_51 : f32 to vector<8x8xf32>
    %139 = arith.cmpf olt, %137, %138 : vector<8x8xf32>
    %cst_52 = arith.constant 5.000000e-01 : f32
    %140 = vector.broadcast %cst_52 : f32 to vector<8x8xf32>
    %141 = arith.mulf %140, %136 : vector<8x8xf32>
    %142 = arith.mulf %141, %136 : vector<8x8xf32>
    %cst_53 = arith.constant 5.000000e-01 : f32
    %143 = vector.broadcast %cst_53 : f32 to vector<8x8xf32>
    %144 = arith.subf %137, %143 : vector<8x8xf32>
    %145 = arith.select %139, %142, %144 : vector<8x8xi1>, vector<8x8xf32>
    %146 = arith.addf %88, %145 : vector<8x8xf32>
    %c1_i32 = arith.constant 1 : i32
    %c0_i32_54 = arith.constant 0 : i32
    %147 = arith.addi %c0_i32_54, %c1_i32 : i32
    %148 = arith.index_cast %147 : i32 to index
    %c0_55 = arith.constant 0 : index
    %149 = vector.load %arg3[%148, %c0_55] : memref<32x8xf32, #tpu.memory_space<vmem>>, vector<1x8xf32>
    %c8_i32_56 = arith.constant 8 : i32
    %150 = arith.addi %c8_i32_56, %c1_i32 : i32
    %151 = arith.index_cast %150 : i32 to index
    %c0_57 = arith.constant 0 : index
    %152 = vector.load %arg3[%151, %c0_57] : memref<32x8xf32, #tpu.memory_space<vmem>>, vector<1x8xf32>
    %c16_i32_58 = arith.constant 16 : i32
    %153 = arith.addi %c16_i32_58, %c1_i32 : i32
    %154 = arith.index_cast %153 : i32 to index
    %c0_59 = arith.constant 0 : index
    %155 = vector.load %arg3[%154, %c0_59] : memref<32x8xf32, #tpu.memory_space<vmem>>, vector<1x8xf32>
    %c24_i32_60 = arith.constant 24 : i32
    %156 = arith.addi %c24_i32_60, %c1_i32 : i32
    %157 = arith.index_cast %156 : i32 to index
    %c0_61 = arith.constant 0 : index
    %158 = vector.load %arg3[%157, %c0_61] : memref<32x8xf32, #tpu.memory_space<vmem>>, vector<1x8xf32>
    %159 = tpu.iota {dimensions = array<i32: 0>} : vector<8x1xi32>
    %160 = vector.broadcast %c1_i32 : i32 to vector<8x1xi32>
    %161 = arith.cmpi eq, %159, %160 : vector<8x1xi32>
    %162 = arith.extui %161 : vector<8x1xi1> to vector<8x1xi32>
    %163 = arith.sitofp %162 : vector<8x1xi32> to vector<8x1xf32>
    %c0_62 = arith.constant 0 : index
    %c0_63 = arith.constant 0 : index
    %164 = vector.load %arg3[%c0_62, %c0_63] : memref<32x8xf32, #tpu.memory_space<vmem>>, vector<32x8xf32>
    %cst_64 = arith.constant dense<0.000000e+00> : vector<32x1xf32>
    %165 = tpu.matmul %164, %163, %cst_64 {dimension_numbers = #tpu.dot_dimension_numbers<[1], [0], [0], [1], [0, 0, 1, 1], [], []>} : vector<32x8xf32>, vector<8x1xf32>, vector<32x1xf32> -> vector<32x1xf32>
    %166 = vector.extract_strided_slice %165 {offsets = [0, 0], sizes = [8, 1], strides = [1, 1]} : vector<32x1xf32> to vector<8x1xf32>
    %167 = vector.extract_strided_slice %165 {offsets = [8, 0], sizes = [8, 1], strides = [1, 1]} : vector<32x1xf32> to vector<8x1xf32>
    %168 = vector.extract_strided_slice %165 {offsets = [16, 0], sizes = [8, 1], strides = [1, 1]} : vector<32x1xf32> to vector<8x1xf32>
    %169 = vector.extract_strided_slice %165 {offsets = [24, 0], sizes = [8, 1], strides = [1, 1]} : vector<32x1xf32> to vector<8x1xf32>
    %170 = arith.index_cast %c1_i32 : i32 to index
    %c0_65 = arith.constant 0 : index
    %171 = vector.load %arg4[%170, %c0_65] : memref<8x1xf32, #tpu.memory_space<vmem>>, vector<1x1xf32>
    %172 = arith.index_cast %c1_i32 : i32 to index
    %c0_66 = arith.constant 0 : index
    %173 = vector.load %arg5[%172, %c0_66] : memref<8x1xf32, #tpu.memory_space<vmem>>, vector<1x1xf32>
    %174 = vector.broadcast %166 : vector<8x1xf32> to vector<8x8xf32>
    %175 = arith.subf %2, %174 : vector<8x8xf32>
    %176 = vector.broadcast %149 : vector<1x8xf32> to vector<8x8xf32>
    %177 = arith.subf %175, %176 : vector<8x8xf32>
    %178 = vector.broadcast %171 : vector<1x1xf32> to vector<8x8xf32>
    %179 = arith.addf %177, %178 : vector<8x8xf32>
    %180 = vector.broadcast %168 : vector<8x1xf32> to vector<8x8xf32>
    %181 = arith.mulf %179, %180 : vector<8x8xf32>
    %182 = vector.broadcast %155 : vector<1x8xf32> to vector<8x8xf32>
    %183 = arith.mulf %181, %182 : vector<8x8xf32>
    %184 = vector.broadcast %167 : vector<8x1xf32> to vector<8x8xf32>
    %185 = arith.subf %3, %184 : vector<8x8xf32>
    %186 = vector.broadcast %152 : vector<1x8xf32> to vector<8x8xf32>
    %187 = arith.subf %185, %186 : vector<8x8xf32>
    %188 = vector.broadcast %173 : vector<1x1xf32> to vector<8x8xf32>
    %189 = arith.addf %187, %188 : vector<8x8xf32>
    %190 = vector.broadcast %169 : vector<8x1xf32> to vector<8x8xf32>
    %191 = arith.mulf %189, %190 : vector<8x8xf32>
    %192 = vector.broadcast %158 : vector<1x8xf32> to vector<8x8xf32>
    %193 = arith.mulf %191, %192 : vector<8x8xf32>
    %194 = arith.subf %183, %193 : vector<8x8xf32>
    %195 = math.absf %194 : vector<8x8xf32>
    %cst_67 = arith.constant 1.000000e+00 : f32
    %196 = vector.broadcast %cst_67 : f32 to vector<8x8xf32>
    %197 = arith.cmpf olt, %195, %196 : vector<8x8xf32>
    %cst_68 = arith.constant 5.000000e-01 : f32
    %198 = vector.broadcast %cst_68 : f32 to vector<8x8xf32>
    %199 = arith.mulf %198, %194 : vector<8x8xf32>
    %200 = arith.mulf %199, %194 : vector<8x8xf32>
    %cst_69 = arith.constant 5.000000e-01 : f32
    %201 = vector.broadcast %cst_69 : f32 to vector<8x8xf32>
    %202 = arith.subf %195, %201 : vector<8x8xf32>
    %203 = arith.select %197, %200, %202 : vector<8x8xi1>, vector<8x8xf32>
    %204 = arith.addf %146, %203 : vector<8x8xf32>
    %c2_i32 = arith.constant 2 : i32
    %c0_i32_70 = arith.constant 0 : i32
    %205 = arith.addi %c0_i32_70, %c2_i32 : i32
    %206 = arith.index_cast %205 : i32 to index
    %c0_71 = arith.constant 0 : index
    %207 = vector.load %arg3[%206, %c0_71] : memref<32x8xf32, #tpu.memory_space<vmem>>, vector<1x8xf32>
    %c8_i32_72 = arith.constant 8 : i32
    %208 = arith.addi %c8_i32_72, %c2_i32 : i32
    %209 = arith.index_cast %208 : i32 to index
    %c0_73 = arith.constant 0 : index
    %210 = vector.load %arg3[%209, %c0_73] : memref<32x8xf32, #tpu.memory_space<vmem>>, vector<1x8xf32>
    %c16_i32_74 = arith.constant 16 : i32
    %211 = arith.addi %c16_i32_74, %c2_i32 : i32
    %212 = arith.index_cast %211 : i32 to index
    %c0_75 = arith.constant 0 : index
    %213 = vector.load %arg3[%212, %c0_75] : memref<32x8xf32, #tpu.memory_space<vmem>>, vector<1x8xf32>
    %c24_i32_76 = arith.constant 24 : i32
    %214 = arith.addi %c24_i32_76, %c2_i32 : i32
    %215 = arith.index_cast %214 : i32 to index
    %c0_77 = arith.constant 0 : index
    %216 = vector.load %arg3[%215, %c0_77] : memref<32x8xf32, #tpu.memory_space<vmem>>, vector<1x8xf32>
    %217 = tpu.iota {dimensions = array<i32: 0>} : vector<8x1xi32>
    %218 = vector.broadcast %c2_i32 : i32 to vector<8x1xi32>
    %219 = arith.cmpi eq, %217, %218 : vector<8x1xi32>
    %220 = arith.extui %219 : vector<8x1xi1> to vector<8x1xi32>
    %221 = arith.sitofp %220 : vector<8x1xi32> to vector<8x1xf32>
    %c0_78 = arith.constant 0 : index
    %c0_79 = arith.constant 0 : index
    %222 = vector.load %arg3[%c0_78, %c0_79] : memref<32x8xf32, #tpu.memory_space<vmem>>, vector<32x8xf32>
    %cst_80 = arith.constant dense<0.000000e+00> : vector<32x1xf32>
    %223 = tpu.matmul %222, %221, %cst_80 {dimension_numbers = #tpu.dot_dimension_numbers<[1], [0], [0], [1], [0, 0, 1, 1], [], []>} : vector<32x8xf32>, vector<8x1xf32>, vector<32x1xf32> -> vector<32x1xf32>
    %224 = vector.extract_strided_slice %223 {offsets = [0, 0], sizes = [8, 1], strides = [1, 1]} : vector<32x1xf32> to vector<8x1xf32>
    %225 = vector.extract_strided_slice %223 {offsets = [8, 0], sizes = [8, 1], strides = [1, 1]} : vector<32x1xf32> to vector<8x1xf32>
    %226 = vector.extract_strided_slice %223 {offsets = [16, 0], sizes = [8, 1], strides = [1, 1]} : vector<32x1xf32> to vector<8x1xf32>
    %227 = vector.extract_strided_slice %223 {offsets = [24, 0], sizes = [8, 1], strides = [1, 1]} : vector<32x1xf32> to vector<8x1xf32>
    %228 = arith.index_cast %c2_i32 : i32 to index
    %c0_81 = arith.constant 0 : index
    %229 = vector.load %arg4[%228, %c0_81] : memref<8x1xf32, #tpu.memory_space<vmem>>, vector<1x1xf32>
    %230 = arith.index_cast %c2_i32 : i32 to index
    %c0_82 = arith.constant 0 : index
    %231 = vector.load %arg5[%230, %c0_82] : memref<8x1xf32, #tpu.memory_space<vmem>>, vector<1x1xf32>
    %232 = vector.broadcast %224 : vector<8x1xf32> to vector<8x8xf32>
    %233 = arith.subf %2, %232 : vector<8x8xf32>
    %234 = vector.broadcast %207 : vector<1x8xf32> to vector<8x8xf32>
    %235 = arith.subf %233, %234 : vector<8x8xf32>
    %236 = vector.broadcast %229 : vector<1x1xf32> to vector<8x8xf32>
    %237 = arith.addf %235, %236 : vector<8x8xf32>
    %238 = vector.broadcast %226 : vector<8x1xf32> to vector<8x8xf32>
    %239 = arith.mulf %237, %238 : vector<8x8xf32>
    %240 = vector.broadcast %213 : vector<1x8xf32> to vector<8x8xf32>
    %241 = arith.mulf %239, %240 : vector<8x8xf32>
    %242 = vector.broadcast %225 : vector<8x1xf32> to vector<8x8xf32>
    %243 = arith.subf %3, %242 : vector<8x8xf32>
    %244 = vector.broadcast %210 : vector<1x8xf32> to vector<8x8xf32>
    %245 = arith.subf %243, %244 : vector<8x8xf32>
    %246 = vector.broadcast %231 : vector<1x1xf32> to vector<8x8xf32>
    %247 = arith.addf %245, %246 : vector<8x8xf32>
    %248 = vector.broadcast %227 : vector<8x1xf32> to vector<8x8xf32>
    %249 = arith.mulf %247, %248 : vector<8x8xf32>
    %250 = vector.broadcast %216 : vector<1x8xf32> to vector<8x8xf32>
    %251 = arith.mulf %249, %250 : vector<8x8xf32>
    %252 = arith.subf %241, %251 : vector<8x8xf32>
    %253 = math.absf %252 : vector<8x8xf32>
    %cst_83 = arith.constant 1.000000e+00 : f32
    %254 = vector.broadcast %cst_83 : f32 to vector<8x8xf32>
    %255 = arith.cmpf olt, %253, %254 : vector<8x8xf32>
    %cst_84 = arith.constant 5.000000e-01 : f32
    %256 = vector.broadcast %cst_84 : f32 to vector<8x8xf32>
    %257 = arith.mulf %256, %252 : vector<8x8xf32>
    %258 = arith.mulf %257, %252 : vector<8x8xf32>
    %cst_85 = arith.constant 5.000000e-01 : f32
    %259 = vector.broadcast %cst_85 : f32 to vector<8x8xf32>
    %260 = arith.subf %253, %259 : vector<8x8xf32>
    %261 = arith.select %255, %258, %260 : vector<8x8xi1>, vector<8x8xf32>
    %262 = arith.addf %204, %261 : vector<8x8xf32>
    %c3_i32 = arith.constant 3 : i32
    %c0_i32_86 = arith.constant 0 : i32
    %263 = arith.addi %c0_i32_86, %c3_i32 : i32
    %264 = arith.index_cast %263 : i32 to index
    %c0_87 = arith.constant 0 : index
    %265 = vector.load %arg3[%264, %c0_87] : memref<32x8xf32, #tpu.memory_space<vmem>>, vector<1x8xf32>
    %c8_i32_88 = arith.constant 8 : i32
    %266 = arith.addi %c8_i32_88, %c3_i32 : i32
    %267 = arith.index_cast %266 : i32 to index
    %c0_89 = arith.constant 0 : index
    %268 = vector.load %arg3[%267, %c0_89] : memref<32x8xf32, #tpu.memory_space<vmem>>, vector<1x8xf32>
    %c16_i32_90 = arith.constant 16 : i32
    %269 = arith.addi %c16_i32_90, %c3_i32 : i32
    %270 = arith.index_cast %269 : i32 to index
    %c0_91 = arith.constant 0 : index
    %271 = vector.load %arg3[%270, %c0_91] : memref<32x8xf32, #tpu.memory_space<vmem>>, vector<1x8xf32>
    %c24_i32_92 = arith.constant 24 : i32
    %272 = arith.addi %c24_i32_92, %c3_i32 : i32
    %273 = arith.index_cast %272 : i32 to index
    %c0_93 = arith.constant 0 : index
    %274 = vector.load %arg3[%273, %c0_93] : memref<32x8xf32, #tpu.memory_space<vmem>>, vector<1x8xf32>
    %275 = tpu.iota {dimensions = array<i32: 0>} : vector<8x1xi32>
    %276 = vector.broadcast %c3_i32 : i32 to vector<8x1xi32>
    %277 = arith.cmpi eq, %275, %276 : vector<8x1xi32>
    %278 = arith.extui %277 : vector<8x1xi1> to vector<8x1xi32>
    %279 = arith.sitofp %278 : vector<8x1xi32> to vector<8x1xf32>
    %c0_94 = arith.constant 0 : index
    %c0_95 = arith.constant 0 : index
    %280 = vector.load %arg3[%c0_94, %c0_95] : memref<32x8xf32, #tpu.memory_space<vmem>>, vector<32x8xf32>
    %cst_96 = arith.constant dense<0.000000e+00> : vector<32x1xf32>
    %281 = tpu.matmul %280, %279, %cst_96 {dimension_numbers = #tpu.dot_dimension_numbers<[1], [0], [0], [1], [0, 0, 1, 1], [], []>} : vector<32x8xf32>, vector<8x1xf32>, vector<32x1xf32> -> vector<32x1xf32>
    %282 = vector.extract_strided_slice %281 {offsets = [0, 0], sizes = [8, 1], strides = [1, 1]} : vector<32x1xf32> to vector<8x1xf32>
    %283 = vector.extract_strided_slice %281 {offsets = [8, 0], sizes = [8, 1], strides = [1, 1]} : vector<32x1xf32> to vector<8x1xf32>
    %284 = vector.extract_strided_slice %281 {offsets = [16, 0], sizes = [8, 1], strides = [1, 1]} : vector<32x1xf32> to vector<8x1xf32>
    %285 = vector.extract_strided_slice %281 {offsets = [24, 0], sizes = [8, 1], strides = [1, 1]} : vector<32x1xf32> to vector<8x1xf32>
    %286 = arith.index_cast %c3_i32 : i32 to index
    %c0_97 = arith.constant 0 : index
    %287 = vector.load %arg4[%286, %c0_97] : memref<8x1xf32, #tpu.memory_space<vmem>>, vector<1x1xf32>
    %288 = arith.index_cast %c3_i32 : i32 to index
    %c0_98 = arith.constant 0 : index
    %289 = vector.load %arg5[%288, %c0_98] : memref<8x1xf32, #tpu.memory_space<vmem>>, vector<1x1xf32>
    %290 = vector.broadcast %282 : vector<8x1xf32> to vector<8x8xf32>
    %291 = arith.subf %2, %290 : vector<8x8xf32>
    %292 = vector.broadcast %265 : vector<1x8xf32> to vector<8x8xf32>
    %293 = arith.subf %291, %292 : vector<8x8xf32>
    %294 = vector.broadcast %287 : vector<1x1xf32> to vector<8x8xf32>
    %295 = arith.addf %293, %294 : vector<8x8xf32>
    %296 = vector.broadcast %284 : vector<8x1xf32> to vector<8x8xf32>
    %297 = arith.mulf %295, %296 : vector<8x8xf32>
    %298 = vector.broadcast %271 : vector<1x8xf32> to vector<8x8xf32>
    %299 = arith.mulf %297, %298 : vector<8x8xf32>
    %300 = vector.broadcast %283 : vector<8x1xf32> to vector<8x8xf32>
    %301 = arith.subf %3, %300 : vector<8x8xf32>
    %302 = vector.broadcast %268 : vector<1x8xf32> to vector<8x8xf32>
    %303 = arith.subf %301, %302 : vector<8x8xf32>
    %304 = vector.broadcast %289 : vector<1x1xf32> to vector<8x8xf32>
    %305 = arith.addf %303, %304 : vector<8x8xf32>
    %306 = vector.broadcast %285 : vector<8x1xf32> to vector<8x8xf32>
    %307 = arith.mulf %305, %306 : vector<8x8xf32>
    %308 = vector.broadcast %274 : vector<1x8xf32> to vector<8x8xf32>
    %309 = arith.mulf %307, %308 : vector<8x8xf32>
    %310 = arith.subf %299, %309 : vector<8x8xf32>
    %311 = math.absf %310 : vector<8x8xf32>
    %cst_99 = arith.constant 1.000000e+00 : f32
    %312 = vector.broadcast %cst_99 : f32 to vector<8x8xf32>
    %313 = arith.cmpf olt, %311, %312 : vector<8x8xf32>
    %cst_100 = arith.constant 5.000000e-01 : f32
    %314 = vector.broadcast %cst_100 : f32 to vector<8x8xf32>
    %315 = arith.mulf %314, %310 : vector<8x8xf32>
    %316 = arith.mulf %315, %310 : vector<8x8xf32>
    %cst_101 = arith.constant 5.000000e-01 : f32
    %317 = vector.broadcast %cst_101 : f32 to vector<8x8xf32>
    %318 = arith.subf %311, %317 : vector<8x8xf32>
    %319 = arith.select %313, %316, %318 : vector<8x8xi1>, vector<8x8xf32>
    %320 = arith.addf %262, %319 : vector<8x8xf32>
    %c4_i32 = arith.constant 4 : i32
    %c0_i32_102 = arith.constant 0 : i32
    %321 = arith.addi %c0_i32_102, %c4_i32 : i32
    %322 = arith.index_cast %321 : i32 to index
    %c0_103 = arith.constant 0 : index
    %323 = vector.load %arg3[%322, %c0_103] : memref<32x8xf32, #tpu.memory_space<vmem>>, vector<1x8xf32>
    %c8_i32_104 = arith.constant 8 : i32
    %324 = arith.addi %c8_i32_104, %c4_i32 : i32
    %325 = arith.index_cast %324 : i32 to index
    %c0_105 = arith.constant 0 : index
    %326 = vector.load %arg3[%325, %c0_105] : memref<32x8xf32, #tpu.memory_space<vmem>>, vector<1x8xf32>
    %c16_i32_106 = arith.constant 16 : i32
    %327 = arith.addi %c16_i32_106, %c4_i32 : i32
    %328 = arith.index_cast %327 : i32 to index
    %c0_107 = arith.constant 0 : index
    %329 = vector.load %arg3[%328, %c0_107] : memref<32x8xf32, #tpu.memory_space<vmem>>, vector<1x8xf32>
    %c24_i32_108 = arith.constant 24 : i32
    %330 = arith.addi %c24_i32_108, %c4_i32 : i32
    %331 = arith.index_cast %330 : i32 to index
    %c0_109 = arith.constant 0 : index
    %332 = vector.load %arg3[%331, %c0_109] : memref<32x8xf32, #tpu.memory_space<vmem>>, vector<1x8xf32>
    %333 = tpu.iota {dimensions = array<i32: 0>} : vector<8x1xi32>
    %334 = vector.broadcast %c4_i32 : i32 to vector<8x1xi32>
    %335 = arith.cmpi eq, %333, %334 : vector<8x1xi32>
    %336 = arith.extui %335 : vector<8x1xi1> to vector<8x1xi32>
    %337 = arith.sitofp %336 : vector<8x1xi32> to vector<8x1xf32>
    %c0_110 = arith.constant 0 : index
    %c0_111 = arith.constant 0 : index
    %338 = vector.load %arg3[%c0_110, %c0_111] : memref<32x8xf32, #tpu.memory_space<vmem>>, vector<32x8xf32>
    %cst_112 = arith.constant dense<0.000000e+00> : vector<32x1xf32>
    %339 = tpu.matmul %338, %337, %cst_112 {dimension_numbers = #tpu.dot_dimension_numbers<[1], [0], [0], [1], [0, 0, 1, 1], [], []>} : vector<32x8xf32>, vector<8x1xf32>, vector<32x1xf32> -> vector<32x1xf32>
    %340 = vector.extract_strided_slice %339 {offsets = [0, 0], sizes = [8, 1], strides = [1, 1]} : vector<32x1xf32> to vector<8x1xf32>
    %341 = vector.extract_strided_slice %339 {offsets = [8, 0], sizes = [8, 1], strides = [1, 1]} : vector<32x1xf32> to vector<8x1xf32>
    %342 = vector.extract_strided_slice %339 {offsets = [16, 0], sizes = [8, 1], strides = [1, 1]} : vector<32x1xf32> to vector<8x1xf32>
    %343 = vector.extract_strided_slice %339 {offsets = [24, 0], sizes = [8, 1], strides = [1, 1]} : vector<32x1xf32> to vector<8x1xf32>
    %344 = arith.index_cast %c4_i32 : i32 to index
    %c0_113 = arith.constant 0 : index
    %345 = vector.load %arg4[%344, %c0_113] : memref<8x1xf32, #tpu.memory_space<vmem>>, vector<1x1xf32>
    %346 = arith.index_cast %c4_i32 : i32 to index
    %c0_114 = arith.constant 0 : index
    %347 = vector.load %arg5[%346, %c0_114] : memref<8x1xf32, #tpu.memory_space<vmem>>, vector<1x1xf32>
    %348 = vector.broadcast %340 : vector<8x1xf32> to vector<8x8xf32>
    %349 = arith.subf %2, %348 : vector<8x8xf32>
    %350 = vector.broadcast %323 : vector<1x8xf32> to vector<8x8xf32>
    %351 = arith.subf %349, %350 : vector<8x8xf32>
    %352 = vector.broadcast %345 : vector<1x1xf32> to vector<8x8xf32>
    %353 = arith.addf %351, %352 : vector<8x8xf32>
    %354 = vector.broadcast %342 : vector<8x1xf32> to vector<8x8xf32>
    %355 = arith.mulf %353, %354 : vector<8x8xf32>
    %356 = vector.broadcast %329 : vector<1x8xf32> to vector<8x8xf32>
    %357 = arith.mulf %355, %356 : vector<8x8xf32>
    %358 = vector.broadcast %341 : vector<8x1xf32> to vector<8x8xf32>
    %359 = arith.subf %3, %358 : vector<8x8xf32>
    %360 = vector.broadcast %326 : vector<1x8xf32> to vector<8x8xf32>
    %361 = arith.subf %359, %360 : vector<8x8xf32>
    %362 = vector.broadcast %347 : vector<1x1xf32> to vector<8x8xf32>
    %363 = arith.addf %361, %362 : vector<8x8xf32>
    %364 = vector.broadcast %343 : vector<8x1xf32> to vector<8x8xf32>
    %365 = arith.mulf %363, %364 : vector<8x8xf32>
    %366 = vector.broadcast %332 : vector<1x8xf32> to vector<8x8xf32>
    %367 = arith.mulf %365, %366 : vector<8x8xf32>
    %368 = arith.subf %357, %367 : vector<8x8xf32>
    %369 = math.absf %368 : vector<8x8xf32>
    %cst_115 = arith.constant 1.000000e+00 : f32
    %370 = vector.broadcast %cst_115 : f32 to vector<8x8xf32>
    %371 = arith.cmpf olt, %369, %370 : vector<8x8xf32>
    %cst_116 = arith.constant 5.000000e-01 : f32
    %372 = vector.broadcast %cst_116 : f32 to vector<8x8xf32>
    %373 = arith.mulf %372, %368 : vector<8x8xf32>
    %374 = arith.mulf %373, %368 : vector<8x8xf32>
    %cst_117 = arith.constant 5.000000e-01 : f32
    %375 = vector.broadcast %cst_117 : f32 to vector<8x8xf32>
    %376 = arith.subf %369, %375 : vector<8x8xf32>
    %377 = arith.select %371, %374, %376 : vector<8x8xi1>, vector<8x8xf32>
    %378 = arith.addf %320, %377 : vector<8x8xf32>
    %c5_i32 = arith.constant 5 : i32
    %c0_i32_118 = arith.constant 0 : i32
    %379 = arith.addi %c0_i32_118, %c5_i32 : i32
    %380 = arith.index_cast %379 : i32 to index
    %c0_119 = arith.constant 0 : index
    %381 = vector.load %arg3[%380, %c0_119] : memref<32x8xf32, #tpu.memory_space<vmem>>, vector<1x8xf32>
    %c8_i32_120 = arith.constant 8 : i32
    %382 = arith.addi %c8_i32_120, %c5_i32 : i32
    %383 = arith.index_cast %382 : i32 to index
    %c0_121 = arith.constant 0 : index
    %384 = vector.load %arg3[%383, %c0_121] : memref<32x8xf32, #tpu.memory_space<vmem>>, vector<1x8xf32>
    %c16_i32_122 = arith.constant 16 : i32
    %385 = arith.addi %c16_i32_122, %c5_i32 : i32
    %386 = arith.index_cast %385 : i32 to index
    %c0_123 = arith.constant 0 : index
    %387 = vector.load %arg3[%386, %c0_123] : memref<32x8xf32, #tpu.memory_space<vmem>>, vector<1x8xf32>
    %c24_i32_124 = arith.constant 24 : i32
    %388 = arith.addi %c24_i32_124, %c5_i32 : i32
    %389 = arith.index_cast %388 : i32 to index
    %c0_125 = arith.constant 0 : index
    %390 = vector.load %arg3[%389, %c0_125] : memref<32x8xf32, #tpu.memory_space<vmem>>, vector<1x8xf32>
    %391 = tpu.iota {dimensions = array<i32: 0>} : vector<8x1xi32>
    %392 = vector.broadcast %c5_i32 : i32 to vector<8x1xi32>
    %393 = arith.cmpi eq, %391, %392 : vector<8x1xi32>
    %394 = arith.extui %393 : vector<8x1xi1> to vector<8x1xi32>
    %395 = arith.sitofp %394 : vector<8x1xi32> to vector<8x1xf32>
    %c0_126 = arith.constant 0 : index
    %c0_127 = arith.constant 0 : index
    %396 = vector.load %arg3[%c0_126, %c0_127] : memref<32x8xf32, #tpu.memory_space<vmem>>, vector<32x8xf32>
    %cst_128 = arith.constant dense<0.000000e+00> : vector<32x1xf32>
    %397 = tpu.matmul %396, %395, %cst_128 {dimension_numbers = #tpu.dot_dimension_numbers<[1], [0], [0], [1], [0, 0, 1, 1], [], []>} : vector<32x8xf32>, vector<8x1xf32>, vector<32x1xf32> -> vector<32x1xf32>
    %398 = vector.extract_strided_slice %397 {offsets = [0, 0], sizes = [8, 1], strides = [1, 1]} : vector<32x1xf32> to vector<8x1xf32>
    %399 = vector.extract_strided_slice %397 {offsets = [8, 0], sizes = [8, 1], strides = [1, 1]} : vector<32x1xf32> to vector<8x1xf32>
    %400 = vector.extract_strided_slice %397 {offsets = [16, 0], sizes = [8, 1], strides = [1, 1]} : vector<32x1xf32> to vector<8x1xf32>
    %401 = vector.extract_strided_slice %397 {offsets = [24, 0], sizes = [8, 1], strides = [1, 1]} : vector<32x1xf32> to vector<8x1xf32>
    %402 = arith.index_cast %c5_i32 : i32 to index
    %c0_129 = arith.constant 0 : index
    %403 = vector.load %arg4[%402, %c0_129] : memref<8x1xf32, #tpu.memory_space<vmem>>, vector<1x1xf32>
    %404 = arith.index_cast %c5_i32 : i32 to index
    %c0_130 = arith.constant 0 : index
    %405 = vector.load %arg5[%404, %c0_130] : memref<8x1xf32, #tpu.memory_space<vmem>>, vector<1x1xf32>
    %406 = vector.broadcast %398 : vector<8x1xf32> to vector<8x8xf32>
    %407 = arith.subf %2, %406 : vector<8x8xf32>
    %408 = vector.broadcast %381 : vector<1x8xf32> to vector<8x8xf32>
    %409 = arith.subf %407, %408 : vector<8x8xf32>
    %410 = vector.broadcast %403 : vector<1x1xf32> to vector<8x8xf32>
    %411 = arith.addf %409, %410 : vector<8x8xf32>
    %412 = vector.broadcast %400 : vector<8x1xf32> to vector<8x8xf32>
    %413 = arith.mulf %411, %412 : vector<8x8xf32>
    %414 = vector.broadcast %387 : vector<1x8xf32> to vector<8x8xf32>
    %415 = arith.mulf %413, %414 : vector<8x8xf32>
    %416 = vector.broadcast %399 : vector<8x1xf32> to vector<8x8xf32>
    %417 = arith.subf %3, %416 : vector<8x8xf32>
    %418 = vector.broadcast %384 : vector<1x8xf32> to vector<8x8xf32>
    %419 = arith.subf %417, %418 : vector<8x8xf32>
    %420 = vector.broadcast %405 : vector<1x1xf32> to vector<8x8xf32>
    %421 = arith.addf %419, %420 : vector<8x8xf32>
    %422 = vector.broadcast %401 : vector<8x1xf32> to vector<8x8xf32>
    %423 = arith.mulf %421, %422 : vector<8x8xf32>
    %424 = vector.broadcast %390 : vector<1x8xf32> to vector<8x8xf32>
    %425 = arith.mulf %423, %424 : vector<8x8xf32>
    %426 = arith.subf %415, %425 : vector<8x8xf32>
    %427 = math.absf %426 : vector<8x8xf32>
    %cst_131 = arith.constant 1.000000e+00 : f32
    %428 = vector.broadcast %cst_131 : f32 to vector<8x8xf32>
    %429 = arith.cmpf olt, %427, %428 : vector<8x8xf32>
    %cst_132 = arith.constant 5.000000e-01 : f32
    %430 = vector.broadcast %cst_132 : f32 to vector<8x8xf32>
    %431 = arith.mulf %430, %426 : vector<8x8xf32>
    %432 = arith.mulf %431, %426 : vector<8x8xf32>
    %cst_133 = arith.constant 5.000000e-01 : f32
    %433 = vector.broadcast %cst_133 : f32 to vector<8x8xf32>
    %434 = arith.subf %427, %433 : vector<8x8xf32>
    %435 = arith.select %429, %432, %434 : vector<8x8xi1>, vector<8x8xf32>
    %436 = arith.addf %378, %435 : vector<8x8xf32>
    %c6_i32 = arith.constant 6 : i32
    %c0_i32_134 = arith.constant 0 : i32
    %437 = arith.addi %c0_i32_134, %c6_i32 : i32
    %438 = arith.index_cast %437 : i32 to index
    %c0_135 = arith.constant 0 : index
    %439 = vector.load %arg3[%438, %c0_135] : memref<32x8xf32, #tpu.memory_space<vmem>>, vector<1x8xf32>
    %c8_i32_136 = arith.constant 8 : i32
    %440 = arith.addi %c8_i32_136, %c6_i32 : i32
    %441 = arith.index_cast %440 : i32 to index
    %c0_137 = arith.constant 0 : index
    %442 = vector.load %arg3[%441, %c0_137] : memref<32x8xf32, #tpu.memory_space<vmem>>, vector<1x8xf32>
    %c16_i32_138 = arith.constant 16 : i32
    %443 = arith.addi %c16_i32_138, %c6_i32 : i32
    %444 = arith.index_cast %443 : i32 to index
    %c0_139 = arith.constant 0 : index
    %445 = vector.load %arg3[%444, %c0_139] : memref<32x8xf32, #tpu.memory_space<vmem>>, vector<1x8xf32>
    %c24_i32_140 = arith.constant 24 : i32
    %446 = arith.addi %c24_i32_140, %c6_i32 : i32
    %447 = arith.index_cast %446 : i32 to index
    %c0_141 = arith.constant 0 : index
    %448 = vector.load %arg3[%447, %c0_141] : memref<32x8xf32, #tpu.memory_space<vmem>>, vector<1x8xf32>
    %449 = tpu.iota {dimensions = array<i32: 0>} : vector<8x1xi32>
    %450 = vector.broadcast %c6_i32 : i32 to vector<8x1xi32>
    %451 = arith.cmpi eq, %449, %450 : vector<8x1xi32>
    %452 = arith.extui %451 : vector<8x1xi1> to vector<8x1xi32>
    %453 = arith.sitofp %452 : vector<8x1xi32> to vector<8x1xf32>
    %c0_142 = arith.constant 0 : index
    %c0_143 = arith.constant 0 : index
    %454 = vector.load %arg3[%c0_142, %c0_143] : memref<32x8xf32, #tpu.memory_space<vmem>>, vector<32x8xf32>
    %cst_144 = arith.constant dense<0.000000e+00> : vector<32x1xf32>
    %455 = tpu.matmul %454, %453, %cst_144 {dimension_numbers = #tpu.dot_dimension_numbers<[1], [0], [0], [1], [0, 0, 1, 1], [], []>} : vector<32x8xf32>, vector<8x1xf32>, vector<32x1xf32> -> vector<32x1xf32>
    %456 = vector.extract_strided_slice %455 {offsets = [0, 0], sizes = [8, 1], strides = [1, 1]} : vector<32x1xf32> to vector<8x1xf32>
    %457 = vector.extract_strided_slice %455 {offsets = [8, 0], sizes = [8, 1], strides = [1, 1]} : vector<32x1xf32> to vector<8x1xf32>
    %458 = vector.extract_strided_slice %455 {offsets = [16, 0], sizes = [8, 1], strides = [1, 1]} : vector<32x1xf32> to vector<8x1xf32>
    %459 = vector.extract_strided_slice %455 {offsets = [24, 0], sizes = [8, 1], strides = [1, 1]} : vector<32x1xf32> to vector<8x1xf32>
    %460 = arith.index_cast %c6_i32 : i32 to index
    %c0_145 = arith.constant 0 : index
    %461 = vector.load %arg4[%460, %c0_145] : memref<8x1xf32, #tpu.memory_space<vmem>>, vector<1x1xf32>
    %462 = arith.index_cast %c6_i32 : i32 to index
    %c0_146 = arith.constant 0 : index
    %463 = vector.load %arg5[%462, %c0_146] : memref<8x1xf32, #tpu.memory_space<vmem>>, vector<1x1xf32>
    %464 = vector.broadcast %456 : vector<8x1xf32> to vector<8x8xf32>
    %465 = arith.subf %2, %464 : vector<8x8xf32>
    %466 = vector.broadcast %439 : vector<1x8xf32> to vector<8x8xf32>
    %467 = arith.subf %465, %466 : vector<8x8xf32>
    %468 = vector.broadcast %461 : vector<1x1xf32> to vector<8x8xf32>
    %469 = arith.addf %467, %468 : vector<8x8xf32>
    %470 = vector.broadcast %458 : vector<8x1xf32> to vector<8x8xf32>
    %471 = arith.mulf %469, %470 : vector<8x8xf32>
    %472 = vector.broadcast %445 : vector<1x8xf32> to vector<8x8xf32>
    %473 = arith.mulf %471, %472 : vector<8x8xf32>
    %474 = vector.broadcast %457 : vector<8x1xf32> to vector<8x8xf32>
    %475 = arith.subf %3, %474 : vector<8x8xf32>
    %476 = vector.broadcast %442 : vector<1x8xf32> to vector<8x8xf32>
    %477 = arith.subf %475, %476 : vector<8x8xf32>
    %478 = vector.broadcast %463 : vector<1x1xf32> to vector<8x8xf32>
    %479 = arith.addf %477, %478 : vector<8x8xf32>
    %480 = vector.broadcast %459 : vector<8x1xf32> to vector<8x8xf32>
    %481 = arith.mulf %479, %480 : vector<8x8xf32>
    %482 = vector.broadcast %448 : vector<1x8xf32> to vector<8x8xf32>
    %483 = arith.mulf %481, %482 : vector<8x8xf32>
    %484 = arith.subf %473, %483 : vector<8x8xf32>
    %485 = math.absf %484 : vector<8x8xf32>
    %cst_147 = arith.constant 1.000000e+00 : f32
    %486 = vector.broadcast %cst_147 : f32 to vector<8x8xf32>
    %487 = arith.cmpf olt, %485, %486 : vector<8x8xf32>
    %cst_148 = arith.constant 5.000000e-01 : f32
    %488 = vector.broadcast %cst_148 : f32 to vector<8x8xf32>
    %489 = arith.mulf %488, %484 : vector<8x8xf32>
    %490 = arith.mulf %489, %484 : vector<8x8xf32>
    %cst_149 = arith.constant 5.000000e-01 : f32
    %491 = vector.broadcast %cst_149 : f32 to vector<8x8xf32>
    %492 = arith.subf %485, %491 : vector<8x8xf32>
    %493 = arith.select %487, %490, %492 : vector<8x8xi1>, vector<8x8xf32>
    %494 = arith.addf %436, %493 : vector<8x8xf32>
    %c7_i32 = arith.constant 7 : i32
    %c0_i32_150 = arith.constant 0 : i32
    %495 = arith.addi %c0_i32_150, %c7_i32 : i32
    %496 = arith.index_cast %495 : i32 to index
    %c0_151 = arith.constant 0 : index
    %497 = vector.load %arg3[%496, %c0_151] : memref<32x8xf32, #tpu.memory_space<vmem>>, vector<1x8xf32>
    %c8_i32_152 = arith.constant 8 : i32
    %498 = arith.addi %c8_i32_152, %c7_i32 : i32
    %499 = arith.index_cast %498 : i32 to index
    %c0_153 = arith.constant 0 : index
    %500 = vector.load %arg3[%499, %c0_153] : memref<32x8xf32, #tpu.memory_space<vmem>>, vector<1x8xf32>
    %c16_i32_154 = arith.constant 16 : i32
    %501 = arith.addi %c16_i32_154, %c7_i32 : i32
    %502 = arith.index_cast %501 : i32 to index
    %c0_155 = arith.constant 0 : index
    %503 = vector.load %arg3[%502, %c0_155] : memref<32x8xf32, #tpu.memory_space<vmem>>, vector<1x8xf32>
    %c24_i32_156 = arith.constant 24 : i32
    %504 = arith.addi %c24_i32_156, %c7_i32 : i32
    %505 = arith.index_cast %504 : i32 to index
    %c0_157 = arith.constant 0 : index
    %506 = vector.load %arg3[%505, %c0_157] : memref<32x8xf32, #tpu.memory_space<vmem>>, vector<1x8xf32>
    %507 = tpu.iota {dimensions = array<i32: 0>} : vector<8x1xi32>
    %508 = vector.broadcast %c7_i32 : i32 to vector<8x1xi32>
    %509 = arith.cmpi eq, %507, %508 : vector<8x1xi32>
    %510 = arith.extui %509 : vector<8x1xi1> to vector<8x1xi32>
    %511 = arith.sitofp %510 : vector<8x1xi32> to vector<8x1xf32>
    %c0_158 = arith.constant 0 : index
    %c0_159 = arith.constant 0 : index
    %512 = vector.load %arg3[%c0_158, %c0_159] : memref<32x8xf32, #tpu.memory_space<vmem>>, vector<32x8xf32>
    %cst_160 = arith.constant dense<0.000000e+00> : vector<32x1xf32>
    %513 = tpu.matmul %512, %511, %cst_160 {dimension_numbers = #tpu.dot_dimension_numbers<[1], [0], [0], [1], [0, 0, 1, 1], [], []>} : vector<32x8xf32>, vector<8x1xf32>, vector<32x1xf32> -> vector<32x1xf32>
    %514 = vector.extract_strided_slice %513 {offsets = [0, 0], sizes = [8, 1], strides = [1, 1]} : vector<32x1xf32> to vector<8x1xf32>
    %515 = vector.extract_strided_slice %513 {offsets = [8, 0], sizes = [8, 1], strides = [1, 1]} : vector<32x1xf32> to vector<8x1xf32>
    %516 = vector.extract_strided_slice %513 {offsets = [16, 0], sizes = [8, 1], strides = [1, 1]} : vector<32x1xf32> to vector<8x1xf32>
    %517 = vector.extract_strided_slice %513 {offsets = [24, 0], sizes = [8, 1], strides = [1, 1]} : vector<32x1xf32> to vector<8x1xf32>
    %518 = arith.index_cast %c7_i32 : i32 to index
    %c0_161 = arith.constant 0 : index
    %519 = vector.load %arg4[%518, %c0_161] : memref<8x1xf32, #tpu.memory_space<vmem>>, vector<1x1xf32>
    %520 = arith.index_cast %c7_i32 : i32 to index
    %c0_162 = arith.constant 0 : index
    %521 = vector.load %arg5[%520, %c0_162] : memref<8x1xf32, #tpu.memory_space<vmem>>, vector<1x1xf32>
    %522 = vector.broadcast %514 : vector<8x1xf32> to vector<8x8xf32>
    %523 = arith.subf %2, %522 : vector<8x8xf32>
    %524 = vector.broadcast %497 : vector<1x8xf32> to vector<8x8xf32>
    %525 = arith.subf %523, %524 : vector<8x8xf32>
    %526 = vector.broadcast %519 : vector<1x1xf32> to vector<8x8xf32>
    %527 = arith.addf %525, %526 : vector<8x8xf32>
    %528 = vector.broadcast %516 : vector<8x1xf32> to vector<8x8xf32>
    %529 = arith.mulf %527, %528 : vector<8x8xf32>
    %530 = vector.broadcast %503 : vector<1x8xf32> to vector<8x8xf32>
    %531 = arith.mulf %529, %530 : vector<8x8xf32>
    %532 = vector.broadcast %515 : vector<8x1xf32> to vector<8x8xf32>
    %533 = arith.subf %3, %532 : vector<8x8xf32>
    %534 = vector.broadcast %500 : vector<1x8xf32> to vector<8x8xf32>
    %535 = arith.subf %533, %534 : vector<8x8xf32>
    %536 = vector.broadcast %521 : vector<1x1xf32> to vector<8x8xf32>
    %537 = arith.addf %535, %536 : vector<8x8xf32>
    %538 = vector.broadcast %517 : vector<8x1xf32> to vector<8x8xf32>
    %539 = arith.mulf %537, %538 : vector<8x8xf32>
    %540 = vector.broadcast %506 : vector<1x8xf32> to vector<8x8xf32>
    %541 = arith.mulf %539, %540 : vector<8x8xf32>
    %542 = arith.subf %531, %541 : vector<8x8xf32>
    %543 = math.absf %542 : vector<8x8xf32>
    %cst_163 = arith.constant 1.000000e+00 : f32
    %544 = vector.broadcast %cst_163 : f32 to vector<8x8xf32>
    %545 = arith.cmpf olt, %543, %544 : vector<8x8xf32>
    %cst_164 = arith.constant 5.000000e-01 : f32
    %546 = vector.broadcast %cst_164 : f32 to vector<8x8xf32>
    %547 = arith.mulf %546, %542 : vector<8x8xf32>
    %548 = arith.mulf %547, %542 : vector<8x8xf32>
    %cst_165 = arith.constant 5.000000e-01 : f32
    %549 = vector.broadcast %cst_165 : f32 to vector<8x8xf32>
    %550 = arith.subf %543, %549 : vector<8x8xf32>
    %551 = arith.select %545, %548, %550 : vector<8x8xi1>, vector<8x8xf32>
    %552 = arith.addf %494, %551 : vector<8x8xf32>
    %c8_i32_166 = arith.constant 8 : i32
    %553 = vector.shape_cast %552 : vector<8x8xf32> to vector<1x8x8xf32>
    %cst_167 = arith.constant dense<0.000000e+00> : vector<1xf32>
    %554 = vector.multi_reduction <add>, %553, %cst_167 [1, 2] : vector<1x8x8xf32> to vector<1xf32>
    %555 = vector.shape_cast %554 : vector<1xf32> to vector<1x1x1xf32>
    %556 = vector.extract %555[0, 0, 0] : f32 from vector<1x1x1xf32>
    %cst_168 = arith.constant 0.001953125 : f32
    %557 = arith.mulf %556, %cst_168 : f32
    %cst_169 = arith.constant 2.500000e+01 : f32
    %558 = arith.mulf %cst_169, %81 : f32
    %cst_170 = arith.constant 5.000000e+01 : f32
    %559 = arith.mulf %cst_170, %557 : f32
    %560 = arith.addf %558, %559 : f32
    %561 = vector.broadcast %560 : f32 to vector<1x1xf32>
    %c0_171 = arith.constant 0 : index
    %c0_172 = arith.constant 0 : index
    %562 = vector.load %arg2[%c0_171, %c0_172] : memref<1x1xf32, #tpu.memory_space<vmem>>, vector<1x1xf32>
    tpu.vector_store %arg2[%c0_171, %c0_172], %561 {strides = array<i32>} : memref<1x1xf32, #tpu.memory_space<vmem>>, vector<1x1xf32>,
    return
  }
}

</mosaic_0001>

<bundles_post_ra>
// kernel: rkd_loss.1
= control target key start
LH: loop header
LB: loop body
LE: loop exit
PB: predicated region body
PF: predicated region fallthrough
CT: control target
= control target key end

     0   :  { %s2184_s0 = inlined_call_operand.vmem [shape: f32[8,128], index: 0, kind: input, shape index: {}]   ;;  %s2185_s1 = inlined_call_operand.vmem [shape: f32[8,128], index: 1, kind: input, shape index: {}]   ;;  %s2186_s2 = inlined_call_operand.hbm [shape: f32[1,1], index: 2, kind: output, shape index: {}]  }
   0x1   :  { %v12_v0 = vld [vmem:[%s2184_s0] sm:$0xff] }
   0x2   :  { %v13_v1 = vld [vmem:[%s2185_s1] sm:$0xff] }
   0x3   :  { %7 = vsyncpa [#allocation6], 0  ;;  %v1859_v2 = vmov 0.0   ;;  %vm1860_vm0 = vmmov 0   ;;  %v154_v3 = vlaneseq  ;;  %v1861_v5 = vmov 1.0  }
   0x4   :  { %1697 = vmatprep.subr.mxu0 %v1859_v2  ;;  %1702 = vmatprep.subr.mxu1 %v1859_v2  ;;  %vm160_vm3 = vcmask 64512   ;;  %v1862_v18 = vmov 0   ;;  %vm266_vm9 = vcmask 7168   ;;  %s1863_s1 = smov 1e-30  }
   0x5   :  { %1698 = vmatpush3.xpose.msra.mxu0 %v12_v0  ;;  %1703 = vmatpush3.xpose.msra.mxu1 %v13_v1  ;;  %v1886_v4 = vshrl.u32 %v154_v3, 7  ;;  %v157_v6 = vand.u32 127, %v154_v3 }
   0x6   :  { %1699 = vmatprep.mubr.msk.f32.mxu0 %vm1860_vm0, %v1859_v2  ;;  %1704 = vmatprep.mubr.msk.f32.mxu1 %vm1860_vm0, %v1859_v2 }
   0x7   :  { %vm273_vm1 = vcmp.eq.s32.totalorder %v1886_v4, 0  ;;  %vm445_vm2 = vcmp.eq.s32.totalorder %v1886_v4, 1  ;;  %vm1895_vm4 = vcmp.eq.s32.totalorder %v1886_v4, %v157_v6  ;;  %vm601_vm5 = vcmp.eq.s32.totalorder %v1886_v4, 2  ;;  %1821 = vset.pattern.permute.xlu1 %v1862_v18  ;;  %1822 = vset.pattern.permute.xlu0 %v1862_v18 }
   0x8   :  { %1700 = vmatmul.mubr.f32.vlgmr.msra.gmra.mrb[0].mxu0 %v12_v0  ;;  %1705 = vmatmul.mubr.f32.vlgmr.msra.gmra.mrb[0].mxu1 %v13_v1  ;;  %vm757_vm6 = vcmp.eq.s32.totalorder %v1886_v4, 3  ;;  %vm913_vm7 = vcmp.eq.s32.totalorder %v1886_v4, 4  ;;  %vm1069_vm8 = vcmp.eq.s32.totalorder %v1886_v4, 5  ;;  %vm1225_vm14 = vcmp.eq.s32.totalorder %v1886_v4, 6 }
   0x9   :  { %1707 = vmatprep.subr.msk.mxu0 %vm273_vm1, %v1861_v5  ;;  %1715 = vmatprep.subr.msk.mxu1 %vm445_vm2, %v1861_v5  ;;  %vm1381_vm15 = vcmp.eq.s32.totalorder %v1886_v4, 7 }
   0xa   :  { %1708 = vmatpush3.msk.msra.mxu0 %vm273_vm1, %v1861_v5  ;;  %1716 = vmatpush3.msk.msra.mxu1 %vm445_vm2, %v1861_v5 }
   0xb   :  { %1723 = vmatprep.subr.msk.mxu0 %vm601_vm5, %v1861_v5  ;;  %1731 = vmatprep.subr.msk.mxu1 %vm757_vm6, %v1861_v5 }
  0xdb   :  { %v1899_v8 = vpop.f32.mrb[0].mxu0  ;;  %v1901_v9 = vpop.f32.mrb[0].mxu1 }
  0xdc   :  { %262 = vst.msk [vmem:[#allocation2] sm:$0xff] %vm160_vm3, %v1899_v8  ;;  %v1701_v10 = vpop.f32.mrb[1].mxu0  ;;  %263 = vst.msk [vmem:[#allocation2 + $0x8] sm:$0xff] %vm160_vm3, %v1901_v9  ;;  %v159_v11 = vsel %vm1895_vm4, %v1899_v8, 0.0  ;;  %v185_v12 = vsel %vm1895_vm4, %v1901_v9, 0.0  ;;  %v1706_v13 = vpop.f32.mrb[1].mxu1 }
  0xdd   :  { %v161_v14 = vsel %vm160_vm3, %v159_v11, 0.0  ;;  %v186_v15 = vsel %vm160_vm3, %v185_v12, 0.0  ;;  %v171_v31 = vmul.f32 2.0, %v1899_v8  ;;  %v196_v38 = vmul.f32 2.0, %v1901_v9 }
  0xde   :  { %162 = vadd.xlane.f32.xlu0 %v161_v14  ;;  %v164_v19 = vrot.slane %v161_v14, 4  ;;  %v189_v21 = vrot.slane %v186_v15, 4 }
  0xe0   :  { %v165_v20 = vadd.f32 %v164_v19, %v161_v14  ;;  %v190_v23 = vadd.f32 %v189_v21, %v186_v15 }
  0xe2   :  { %187 = vadd.xlane.f32.xlu0 %v186_v15  ;;  %v166_v22 = vrot.slane %v165_v20, 2  ;;  %v191_v24 = vrot.slane %v190_v23, 2 }
  0xe3   :  { %v1915_v16 = vld [vmem:[#allocation2] sm:$0xff]  ;;  %v1917_v17 = vld [vmem:[#allocation2 + $0x8] sm:$0xff] }
  0xe4   :  { %1709 = vmatprep.mubr.msk.f32.mxu0 %vm160_vm3, %v1915_v16  ;;  %1717 = vmatprep.mubr.msk.f32.mxu1 %vm160_vm3, %v1915_v16  ;;  %v167_v25 = vadd.f32 %v166_v22, %v165_v20  ;;  %v192_v27 = vadd.f32 %v191_v24, %v190_v23 }
  0xe5   :  { %1710 = vmatmul.mubr.msk.f32.vlgmr.msra.gmra.mrb[2].mxu0 %vm160_vm3, %v1917_v17  ;;  %1718 = vmatmul.mubr.msk.f32.vlgmr.msra.gmra.mrb[2].mxu1 %vm160_vm3, %v1917_v17 }
  0xe6   :  { %1724 = vmatpush3.msk.msra.mxu0 %vm601_vm5, %v1861_v5  ;;  %1732 = vmatpush3.msk.msra.mxu1 %vm757_vm6, %v1861_v5  ;;  %v168_v26 = vrot.slane %v167_v25, 1  ;;  %v193_v29 = vrot.slane %v192_v27, 1 }
  0xe7   :  { %1739 = vmatprep.subr.msk.mxu0 %vm913_vm7, %v1861_v5  ;;  %1747 = vmatprep.subr.msk.mxu1 %vm1069_vm8, %v1861_v5 }
  0xe8   :  { %v169_v28 = vadd.f32 %v168_v26, %v167_v25  ;;  %v194_v34 = vadd.f32 %v193_v29, %v192_v27 }
 0x16b   :  { %v163_v30 = vpop.xlane.xlu0 %162 }
 0x16c   :  { %v170_v32 = vadd.f32 %v169_v28, %v163_v30  ;;  %267 = vst.msk [vmem:[#allocation3] sm:$0xff] %vm266_vm9, %v163_v30 }
 0x16e   :  { %v172_v33 = vsub.f32 %v170_v32, %v171_v31 }
 0x16f   :  { %v188_v35 = vpop.xlane.xlu0 %187 }
 0x170   :  { %v173_v36 = vmax.f32 %v172_v33, 1e-12  ;;  %v182_v37 = vmax.f32 %v172_v33, 1e-24  ;;  %v195_v39 = vadd.f32 %v194_v34, %v188_v35  ;;  %268 = vst.msk [vmem:[#allocation4] sm:$0xff] %vm266_vm9, %v188_v35 }
 0x172   :  { %1823 = vrsqrt.f32 %v182_v37  ;;  %v197_v40 = vsub.f32 %v195_v39, %v196_v38  ;;  %vm176_vm10 = vcmp.eq.f32.partialorder %v173_v36, inf  ;;  %v179_v47 = vand.u32 2147483648, %v173_v36 }
 0x173   :  { %1825 = vrsqrt.f32 %v173_v36  ;;  %vm178_vm11 = vcmp.eq.f32.partialorder %v173_v36, 0.0 }
 0x174   :  { %v198_v41 = vmax.f32 %v197_v40, 1e-12  ;;  %v207_v42 = vmax.f32 %v197_v40, 1e-24 }
 0x176   :  { %1827 = vrsqrt.f32 %v207_v42  ;;  %vm201_vm12 = vcmp.eq.f32.partialorder %v198_v41, inf  ;;  %v204_v56 = vand.u32 2147483648, %v198_v41  ;;  %vm203_vm13 = vcmp.eq.f32.partialorder %v198_v41, 0.0 }
 0x177   :  { %1829 = vrsqrt.f32 %v198_v41 }
 0x17c   :  { %v1824_v43 = vpop.eup %1823 }
 0x17d   :  { %v1826_v44 = vpop.eup %1825  ;;  %v184_v45 = vsel %vm1895_vm4, 0.0, %v1824_v43 }
 0x17e   :  { %264 = vst.msk [vmem:[#allocation2 + $0x10] sm:$0xff] %vm160_vm3, %v184_v45  ;;  %v175_v46 = vmul.f32 %v1826_v44, %v173_v36 }
 0x180   :  { %v1828_v48 = vpop.eup %1827  ;;  %v177_v49 = vsel %vm176_vm10, %v173_v36, %v175_v46  ;;  %vm1548_vm10 = vcmask 0  }
 0x181   :  { %v1830_v50 = vpop.eup %1829  ;;  %v209_v51 = vsel %vm1895_vm4, 0.0, %v1828_v48  ;;  %v180_v52 = vsel %vm178_vm11, %v179_v47, %v177_v49 }
 0x182   :  { %265 = vst.msk [vmem:[#allocation2 + $0x18] sm:$0xff] %vm160_vm3, %v209_v51  ;;  %v1951_v53 = vsel %vm1895_vm4, 0.0, %v180_v52  ;;  %v200_v54 = vmul.f32 %v1830_v50, %v198_v41 }
 0x183   :  { %v210_v55 = vsel %vm160_vm3, %v1951_v53, 0.0 }
 0x184   :  { %211 = vadd.xlane.f32.xlu1 %v210_v55  ;;  %v202_v57 = vsel %vm201_vm12, %v198_v41, %v200_v54 }
 0x185   :  { %v278_v58 = vld [vmem:[#allocation2 + $0x10] sm:$0xff]  ;;  %v205_v59 = vsel %vm203_vm13, %v204_v56, %v202_v57 }
 0x186   :  { %1712 = vmatprep.mubr.msk.f32.mxu0 %vm160_vm3, %v278_v58  ;;  %1720 = vmatprep.mubr.msk.f32.mxu1 %vm160_vm3, %v278_v58  ;;  %v1959_v60 = vsel %vm1895_vm4, 0.0, %v205_v59 }
 0x187   :  { %v227_v61 = vsel %vm160_vm3, %v1959_v60, 0.0 }
 0x188   :  { %228 = vadd.xlane.f32.xlu1 %v227_v61 }
 0x189   :  { %v279_v62 = vld [vmem:[#allocation2 + $0x18] sm:$0xff] }
 0x18a   :  { %1713 = vmatmul.mubr.msk.f32.gmra.mrb[4].mxu0 %vm160_vm3, %v279_v62  ;;  %1721 = vmatmul.mubr.msk.f32.gmra.mrb[4].mxu1 %vm160_vm3, %v279_v62 }
 0x18b   :  { %1725 = vmatprep.mubr.msk.f32.mxu0 %vm160_vm3, %v1915_v16  ;;  %1733 = vmatprep.mubr.msk.f32.mxu1 %vm160_vm3, %v1915_v16 }
 0x18e   :  { %1726 = vmatmul.mubr.msk.f32.vlgmr.msra.gmra.mrb[6].mxu0 %vm160_vm3, %v1917_v17  ;;  %1734 = vmatmul.mubr.msk.f32.vlgmr.msra.gmra.mrb[6].mxu1 %vm160_vm3, %v1917_v17 }
 0x18f   :  { %1728 = vmatprep.mubr.msk.f32.mxu0 %vm160_vm3, %v278_v58  ;;  %1736 = vmatprep.mubr.msk.f32.mxu1 %vm160_vm3, %v278_v58 }
 0x190   :  { %1740 = vmatpush3.msk.msra.mxu0 %vm913_vm7, %v1861_v5  ;;  %1748 = vmatpush3.msk.msra.mxu1 %vm1069_vm8, %v1861_v5 }
 0x191   :  { %1755 = vmatprep.subr.msk.mxu0 %vm1225_vm14, %v1861_v5  ;;  %1763 = vmatprep.subr.msk.mxu1 %vm1381_vm15, %v1861_v5 }
 0x192   :  { %1729 = vmatmul.mubr.msk.f32.gmra.mrb[8].mxu0 %vm160_vm3, %v279_v62  ;;  %1737 = vmatmul.mubr.msk.f32.gmra.mrb[8].mxu1 %vm160_vm3, %v279_v62 }
 0x193   :  { %1741 = vmatprep.mubr.msk.f32.mxu0 %vm160_vm3, %v1915_v16  ;;  %1749 = vmatprep.mubr.msk.f32.mxu1 %vm160_vm3, %v1915_v16 }
 0x196   :  { %1742 = vmatmul.mubr.msk.f32.vlgmr.msra.gmra.mrb[10].mxu0 %vm160_vm3, %v1917_v17  ;;  %1750 = vmatmul.mubr.msk.f32.vlgmr.msra.gmra.mrb[10].mxu1 %vm160_vm3, %v1917_v17 }
 0x197   :  { %1744 = vmatprep.mubr.msk.f32.mxu0 %vm160_vm3, %v278_v58  ;;  %1752 = vmatprep.mubr.msk.f32.mxu1 %vm160_vm3, %v278_v58 }
 0x198   :  { %1756 = vmatpush3.msk.msra.mxu0 %vm1225_vm14, %v1861_v5  ;;  %1764 = vmatpush3.msk.msra.mxu1 %vm1381_vm15, %v1861_v5 }
 0x19a   :  { %1745 = vmatmul.mubr.msk.f32.gmra.mrb[12].mxu0 %vm160_vm3, %v279_v62  ;;  %1753 = vmatmul.mubr.msk.f32.gmra.mrb[12].mxu1 %vm160_vm3, %v279_v62 }
 0x19b   :  { %1757 = vmatprep.mubr.msk.f32.mxu0 %vm160_vm3, %v1915_v16  ;;  %1765 = vmatprep.mubr.msk.f32.mxu1 %vm160_vm3, %v1915_v16 }
 0x19e   :  { %1758 = vmatmul.mubr.msk.f32.vlgmr.msra.gmra.mrb[14].mxu0 %vm160_vm3, %v1917_v17  ;;  %1766 = vmatmul.mubr.msk.f32.vlgmr.msra.gmra.mrb[14].mxu1 %vm160_vm3, %v1917_v17 }
 0x19f   :  { %1760 = vmatprep.mubr.msk.f32.mxu0 %vm160_vm3, %v278_v58  ;;  %1768 = vmatprep.mubr.msk.f32.mxu1 %vm160_vm3, %v278_v58 }
 0x1a2   :  { %1761 = vmatmul.mubr.msk.f32.gmra.mrb[16].mxu0 %vm160_vm3, %v279_v62  ;;  %1769 = vmatmul.mubr.msk.f32.gmra.mrb[16].mxu1 %vm160_vm3, %v279_v62 }
 0x1b8   :  { %v2021_v63 = vpop.f32.mrb[2].mxu0  ;;  %v1719_v0 = vpop.f32.mrb[2].mxu1 }
 0x1b9   :  { %v358_v1 = vpop.f32.mrb[3].mxu0  ;;  %v514_v2 = vpop.f32.mrb[3].mxu1 }
 0x1ba   :  { %381 = vperm.xlu1 %1821, %v358_v1  }
 0x1be   :  { %537 = vperm.xlu1 %1821, %v514_v2  }
 0x1c2   :  { %564 = vperm.xlu1 %1821, %v1719_v0  }
 0x211   :  { %v212_v3 = vpop.xlane.xlu1 %211 }
 0x212   :  { %v213_v4 = vrot.slane %v212_v3, 4 }
 0x214   :  { %v214_v5 = vadd.f32 %v213_v4, %v212_v3 }
 0x215   :  { %v229_v12 = vpop.xlane.xlu1 %228 }
 0x216   :  { %v215_v6 = vrot.slane %v214_v5, 2  ;;  %v230_v13 = vrot.slane %v229_v12, 4 }
 0x218   :  { %v216_v7 = vadd.f32 %v215_v6, %v214_v5  ;;  %v231_v14 = vadd.f32 %v230_v13, %v229_v12 }
 0x21a   :  { %v217_v10 = vrot.slane %v216_v7, 1  ;;  %v232_v15 = vrot.slane %v231_v14, 2 }
 0x21c   :  { %v218_v11 = vadd.f32 %v217_v10, %v216_v7  ;;  %v233_v17 = vadd.f32 %v232_v15, %v231_v14 }
 0x21e   :  { %1771 = vpush %v218_v11  ;;  %v234_v18 = vrot.slane %v233_v17, 1 }
 0x220   :  { %v235_v20 = vadd.f32 %v234_v18, %v233_v17  ;;  %v377_v17 = vld [vmem:[#allocation3] sm:$0x1]  ;;  %v378_v18 = vld [vmem:[#allocation4] sm:$0x1] }
 0x24f   :  { %s1772_s0 = spop %1771 }
 0x250   :  { %s220_s13 = smax.f32 %s1863_s1, %s1772_s0 }
 0x251   :  { %v221_v16 = vstv %s220_s13 }
 0x252   :  { %1831 = vrcp.f32 %v221_v16 }
 0x25c   :  { %v1832_v19 = vpop.eup %1831 }
 0x25d   :  { %1773 = vpush %v1832_v19  ;;  %v1714_v21 = vpop.f32.mrb[4].mxu0  ;;  %v1722_v22 = vpop.f32.mrb[4].mxu1  ;;  %v533_v19 = vld [vmem:[#allocation3 + $0x1] sm:$0x1] }
 0x25e   :  { %1775 = vpush %v235_v20  ;;  %v368_v23 = vpop.f32.mrb[5].mxu0  ;;  %v2024_v24 = vpop.f32.mrb[5].mxu1 }
 0x261   :  { %v1727_v25 = vpop.f32.mrb[6].mxu0  ;;  %v1735_v26 = vpop.f32.mrb[6].mxu1 }
 0x262   :  { %v670_v27 = vpop.f32.mrb[7].mxu0  ;;  %v826_v28 = vpop.f32.mrb[7].mxu1 }
 0x263   :  { %693 = vperm.xlu1 %1821, %v670_v27   ;;  %v1001_v27 = vld [vmem:[#allocation3 + $0x4] sm:$0x1] }
 0x265   :  { %v1730_v29 = vpop.f32.mrb[8].mxu0  ;;  %v1738_v30 = vpop.f32.mrb[8].mxu1 }
 0x266   :  { %v680_v31 = vpop.f32.mrb[9].mxu0  ;;  %v836_v32 = vpop.f32.mrb[9].mxu1 }
 0x267   :  { %720 = vperm.xlu1 %1821, %v1727_v25   ;;  %v845_v25 = vld [vmem:[#allocation3 + $0x3] sm:$0x1] }
 0x269   :  { %v1743_v33 = vpop.f32.mrb[10].mxu0  ;;  %v1751_v34 = vpop.f32.mrb[10].mxu1 }
 0x26a   :  { %v982_v35 = vpop.f32.mrb[11].mxu0  ;;  %v1138_v36 = vpop.f32.mrb[11].mxu1 }
 0x26b   :  { %849 = vperm.xlu1 %1821, %v826_v28  }
 0x26d   :  { %v1746_v37 = vpop.f32.mrb[12].mxu0  ;;  %v1754_v38 = vpop.f32.mrb[12].mxu1 }
 0x26e   :  { %v992_v39 = vpop.f32.mrb[13].mxu0  ;;  %v1148_v40 = vpop.f32.mrb[13].mxu1 }
 0x26f   :  { %876 = vperm.xlu1 %1821, %v1735_v26   ;;  %v846_v26 = vld [vmem:[#allocation4 + $0x3] sm:$0x1] }
 0x271   :  { %v1759_v41 = vpop.f32.mrb[14].mxu0  ;;  %v1767_v42 = vpop.f32.mrb[14].mxu1 }
 0x272   :  { %v1294_v43 = vpop.f32.mrb[15].mxu0  ;;  %v1450_v44 = vpop.f32.mrb[15].mxu1 }
 0x273   :  { %397 = vperm.xlu1 %1821, %v368_v23   ;;  %v690_v23 = vld [vmem:[#allocation4 + $0x2] sm:$0x1] }
 0x275   :  { %v1762_v45 = vpop.f32.mrb[16].mxu0  ;;  %v1770_v46 = vpop.f32.mrb[16].mxu1 }
 0x276   :  { %v1304_v47 = vpop.f32.mrb[17].mxu0  ;;  %v1460_v48 = vpop.f32.mrb[17].mxu1 }
 0x277   :  { %424 = vperm.xlu1 %1821, %v1714_v21   ;;  %v534_v21 = vld [vmem:[#allocation4 + $0x1] sm:$0x1] }
 0x27b   :  { %580 = vperm.xlu1 %1821, %v1722_v22   ;;  %v689_v22 = vld [vmem:[#allocation3 + $0x2] sm:$0x1] }
 0x27f   :  { %1032 = vperm.xlu1 %1821, %v1743_v33  }
 0x283   :  { %736 = vperm.xlu1 %1821, %v1730_v29   ;;  %v1002_v29 = vld [vmem:[#allocation4 + $0x4] sm:$0x1] }
 0x287   :  { %1188 = vperm.xlu1 %1821, %v1751_v34   ;;  %v1314_v34 = vld [vmem:[#allocation4 + $0x6] sm:$0x1] }
 0x28b   :  { %892 = vperm.xlu1 %1821, %v1738_v30   ;;  %v1157_v30 = vld [vmem:[#allocation3 + $0x5] sm:$0x1] }
 0x28e   :  { %s1774_s14 = spop %1773 }
 0x28f   :  { %s1776_s15 = spop %1775  ;;  %1344 = vperm.xlu1 %1821, %v1759_v41   ;;  %s224_s17 = smul.f32 56.0, %s1774_s14 }
 0x290   :  { %s237_s16 = smax.f32 %s1863_s1, %s1776_s15  ;;  %s1864_s1 = smov [#allocation5]  }
 0x291   :  { %v238_v49 = vstv %s237_s16  ;;  %v225_v51 = vstv %s224_s17  ;;  %s1556_s13 = sshll.u32 %s1864_s1, 4  ;;  %s1557_s13 = int_to_ptr.vmem [resolvable:$true] %s1556_s13 }
 0x292   :  { %1833 = vrcp.f32 %v238_v49  ;;  %v226_v54 = vmul.f32 %v225_v51, %v1951_v53  ;;  %v2032_v53 = vpop.permute.xlu1 %381  ;;  %s1835_s15 = scalar_lea.vmem %s1557_s13, 16  ;;  %s1839_s16 = scalar_lea.vmem %s1557_s13, 32 }
 0x293   :  { %1048 = vperm.xlu1 %1821, %v1746_v37   ;;  %v1470_v37 = vld [vmem:[#allocation4 + $0x7] sm:$0x1]  ;;  %p1836_p0 = scmp.ne.s32.totalorder %s1557_s13, %s1835_s15  ;;  %p1840_p1 = scmp.lt.s32.totalorder %s1557_s13, %s1557_s13 }
 0x294   :  { %p1841_p2 = scmp.lt.s32.totalorder %s1839_s16, %s1835_s15 }
 0x296   :  { %p1842_p3 = por %p1841_p2, %p1840_p1 }
 0x297   :  { %1500 = vperm.xlu1 %1821, %v1767_v42  }
 0x298   :  { %p1843_p4 = pnand %p1842_p3, %p1836_p0 }
 0x29b   :  { %1204 = vperm.xlu1 %1821, %v1754_v38  }
 0x29c   :  { %v1834_v50 = vpop.eup %1833 }
 0x29d   :  { %1777 = vpush %v1834_v50 }
 0x29f   :  { %1360 = vperm.xlu1 %1821, %v1762_v45  }
 0x2a3   :  { %1516 = vperm.xlu1 %1821, %v1770_v46  }
 0x2ce   :  { %s1778_s18 = spop %1777 }
 0x2cf   :  { %s241_s19 = smul.f32 56.0, %s1778_s18 }
 0x2d1   :  { %v242_v52 = vstv %s241_s19 }
 0x2d2   :  { %v243_v55 = vmul.f32 %v242_v52, %v1959_v60  ;;  %v2034_v60 = vpop.permute.xlu1 %537 }
 0x2d4   :  { %v244_v56 = vsub.f32 %v226_v54, %v243_v55  ;;  %v1571_v54 = vld [vmem:[#allocation2] ss:$0 sm:$0xff] }
 0x2d6   :  { %v245_v57 = vand.u32 2147483647, %v244_v56  ;;  %v247_v58 = vmul.f32 0.5, %v244_v56  ;;  %v2036_v1 = vpop.permute.xlu1 %564 }
 0x2d7   :  { %v567_v49 = vsub.f32 %v1901_v9, %v2036_v1  ;;  %v1593_v1 = vld [vmem:[#allocation2 + $0x2] ss:$0 sm:$0xff] }
 0x2d8   :  { %vm246_vm0 = vcmp.lt.f32.partialorder %v245_v57, 1.0  ;;  %v248_v59 = vmul.f32 %v247_v58, %v244_v56  ;;  %v1564_v61 = vadd.f32 -0.5, %v245_v57 }
 0x2da   :  { %v250_v62 = vsel %vm246_vm0, %v248_v59, %v1564_v61  ;;  %v1582_v59 = vld [vmem:[#allocation2 + $0x1] ss:$0 sm:$0xff]  ;;  %v1584_v61 = vld [vmem:[#allocation2 + $0x9] ss:$0 sm:$0xff] }
 0x2db   :  { %v251_v0 = vsel %vm160_vm3, %v250_v62, 0.0 }
 0x2dc   :  { %252 = vadd.xlane.f32.xlu0 %v251_v0 }
 0x2e2   :  { %v2038_v2 = vpop.permute.xlu1 %693 }
 0x2e3   :  { %v696_v50 = vsub.f32 %v1899_v8, %v2038_v2  ;;  %v1595_v2 = vld [vmem:[#allocation2 + $0xa] ss:$0 sm:$0xff] }
 0x2f2   :  { %408 = vperm.xlu0 %1822, %v2021_v63   ;;  %v2040_v63 = vpop.permute.xlu1 %720 }
 0x2f3   :  { %v723_v51 = vsub.f32 %v1901_v9, %v2040_v63 }
 0x2f6   :  { %553 = vperm.xlu0 %1822, %v2024_v24   ;;  %v2042_v3 = vpop.permute.xlu1 %849 }
 0x2f7   :  { %v852_v55 = vsub.f32 %v1899_v8, %v2042_v3 }
 0x2fa   :  { %1005 = vperm.xlu0 %1822, %v982_v35   ;;  %v2044_v4 = vpop.permute.xlu1 %876  ;;  %v1469_v35 = vld [vmem:[#allocation3 + $0x7] sm:$0x1] }
 0x2fb   :  { %v879_v56 = vsub.f32 %v1901_v9, %v2044_v4  ;;  %v701_v4 = vsub.f32 %v696_v50, %v1593_v1 }
 0x2fe   :  { %709 = vperm.xlu0 %1822, %v680_v31   ;;  %v2046_v10 = vpop.permute.xlu1 %397  ;;  %v1158_v31 = vld [vmem:[#allocation4 + $0x5] sm:$0x1] }
 0x302   :  { %1161 = vperm.xlu0 %1822, %v1138_v36   ;;  %v2048_v14 = vpop.permute.xlu1 %424 }
 0x306   :  { %865 = vperm.xlu0 %1822, %v836_v32   ;;  %v2052_v20 = vpop.permute.xlu1 %580  ;;  %v1313_v32 = vld [vmem:[#allocation3 + $0x6] sm:$0x1] }
 0x30a   :  { %1317 = vperm.xlu0 %1822, %v1294_v43   ;;  %v1033_v28 = vpop.permute.xlu1 %1032 }
 0x30b   :  { %v1035_v57 = vsub.f32 %v1901_v9, %v1033_v28 }
 0x30e   :  { %1021 = vperm.xlu0 %1822, %v992_v39   ;;  %v2058_v36 = vpop.permute.xlu1 %736 }
 0x312   :  { %1473 = vperm.xlu0 %1822, %v1450_v44   ;;  %v1189_v39 = vpop.permute.xlu1 %1188 }
 0x313   :  { %v1191_v62 = vsub.f32 %v1901_v9, %v1189_v39  ;;  %v1637_v39 = vld [vmem:[#allocation2 + $0x6] ss:$0 sm:$0xff] }
 0x316   :  { %1177 = vperm.xlu0 %1822, %v1148_v40   ;;  %v2062_v41 = vpop.permute.xlu1 %892 }
 0x31a   :  { %1333 = vperm.xlu0 %1822, %v1304_v47   ;;  %v1345_v43 = vpop.permute.xlu1 %1344  ;;  %v384_v47 = vsub.f32 %v1899_v8, %v2032_v53 }
 0x31b   :  { %v1347_v63 = vsub.f32 %v1901_v9, %v1345_v43 }
 0x31c   :  { %v389_v58 = vsub.f32 %v384_v47, %v1571_v54 }
 0x31e   :  { %1489 = vperm.xlu0 %1822, %v1460_v48   ;;  %v2066_v45 = vpop.permute.xlu1 %1048  ;;  %v540_v48 = vsub.f32 %v1899_v8, %v2034_v60  ;;  %v572_v60 = vsub.f32 %v567_v49, %v1584_v61 }
 0x320   :  { %v545_v53 = vsub.f32 %v540_v48, %v1582_v59 }
 0x322   :  { %v1501_v52 = vpop.permute.xlu1 %1500 }
 0x323   :  { %v1503_v3 = vsub.f32 %v1901_v9, %v1501_v52 }
 0x369   :  { %v253_v5 = vpop.xlane.xlu0 %252 }
 0x36a   :  { %v254_v6 = vrot.slane %v253_v5, 4 }
 0x36c   :  { %v255_v7 = vadd.f32 %v254_v6, %v253_v5  ;;  %v728_v6 = vsub.f32 %v723_v51, %v1595_v2  ;;  %v1572_v51 = vld [vmem:[#allocation2 + $0x10] ss:$0 sm:$0xff] }
 0x36e   :  { %v256_v11 = vrot.slane %v255_v7, 2 }
 0x370   :  { %v257_v12 = vadd.f32 %v256_v11, %v255_v7  ;;  %v1604_v7 = vld [vmem:[#allocation2 + $0x3] ss:$0 sm:$0xff]  ;;  %v1606_v11 = vld [vmem:[#allocation2 + $0xb] ss:$0 sm:$0xff] }
 0x371   :  { %v2050_v16 = vpop.permute.xlu0 %408 }
 0x372   :  { %v258_v13 = vrot.slane %v257_v12, 1  ;;  %v411_v0 = vsub.f32 %v1901_v9, %v2050_v16  ;;  %v857_v16 = vsub.f32 %v852_v55, %v1604_v7 }
 0x374   :  { %v259_v15 = vadd.f32 %v258_v13, %v257_v12  ;;  %v1617_v12 = vld [vmem:[#allocation2 + $0xc] ss:$0 sm:$0xff] }
 0x375   :  { %v2054_v24 = vpop.permute.xlu0 %553 }
 0x376   :  { %1779 = vpush %v259_v15 }
 0x377   :  { %1781 = vpush %v377_v17  ;;  %v884_v17 = vsub.f32 %v879_v56, %v1606_v11 }
 0x378   :  { %1783 = vpush %v378_v18  ;;  %v2095_v18 = vsub.f32 %v1035_v57, %v1617_v12  ;;  %v1574_v57 = vld [vmem:[#allocation2 + $0x18] ss:$0 sm:$0xff] }
 0x379   :  { %1785 = vpush %v533_v19  ;;  %v2056_v33 = vpop.permute.xlu0 %1005  ;;  %v1628_v19 = vld [vmem:[#allocation2 + $0xd] ss:$0 sm:$0xff] }
 0x37a   :  { %1787 = vpush %v534_v21  ;;  %v1008_v13 = vsub.f32 %v1899_v8, %v2056_v33  ;;  %v1573_v21 = vld [vmem:[#allocation2 + $0x8] ss:$0 sm:$0xff] }
 0x37b   :  { %1789 = vpush %v689_v22  ;;  %v2098_v22 = vsub.f32 %v1191_v62, %v1628_v19 }
 0x37c   :  { %1791 = vpush %v690_v23  ;;  %v1639_v23 = vld [vmem:[#allocation2 + $0xe] ss:$0 sm:$0xff] }
 0x37d   :  { %1793 = vpush %v845_v25  ;;  %v2060_v38 = vpop.permute.xlu0 %709  ;;  %v1650_v25 = vld [vmem:[#allocation2 + $0xf] ss:$0 sm:$0xff] }
 0x37e   :  { %1795 = vpush %v846_v26  ;;  %v416_v26 = vsub.f32 %v411_v0, %v1573_v21 }
 0x37f   :  { %1797 = vpush %v1001_v27 }
 0x380   :  { %1799 = vpush %v1002_v29  ;;  %v2101_v29 = vsub.f32 %v1347_v63, %v1639_v23  ;;  %v1585_v63 = vld [vmem:[#allocation2 + $0x19] ss:$0 sm:$0xff]  ;;  %v1605_v23 = vld [vmem:[#allocation2 + $0x13] ss:$0 sm:$0xff] }
 0x381   :  { %1801 = vpush %v1157_v30  ;;  %v1162_v40 = vpop.permute.xlu0 %1161  ;;  %v2103_v30 = vsub.f32 %v1503_v3, %v1650_v25 }
 0x382   :  { %1803 = vpush %v1158_v31  ;;  %v1164_v15 = vsub.f32 %v1899_v8, %v1162_v40  ;;  %v1615_v31 = vld [vmem:[#allocation2 + $0x4] ss:$0 sm:$0xff] }
 0x383   :  { %1805 = vpush %v1313_v32  ;;  %v1626_v32 = vld [vmem:[#allocation2 + $0x5] ss:$0 sm:$0xff] }
 0x384   :  { %1807 = vpush %v1314_v34 }
 0x385   :  { %1809 = vpush %v1469_v35  ;;  %v2064_v42 = vpop.permute.xlu0 %865  ;;  %v1013_v35 = vsub.f32 %v1008_v13, %v1615_v31  ;;  %v1596_v13 = vld [vmem:[#allocation2 + $0x1a] ss:$0 sm:$0xff] }
 0x386   :  { %1811 = vpush %v1470_v37  ;;  %v2105_v37 = vsub.f32 %v1164_v15, %v1626_v32  ;;  %v1607_v32 = vld [vmem:[#allocation2 + $0x1b] ss:$0 sm:$0xff] }
 0x389   :  { %v1318_v44 = vpop.permute.xlu0 %1317 }
 0x38a   :  { %v1320_v9 = vsub.f32 %v1899_v8, %v1318_v44 }
 0x38c   :  { %v2107_v44 = vsub.f32 %v1320_v9, %v1637_v39 }
 0x38d   :  { %v2068_v46 = vpop.permute.xlu0 %1021 }
 0x391   :  { %v1474_v5 = vpop.permute.xlu0 %1473 }
 0x392   :  { %v1476_v27 = vsub.f32 %v1899_v8, %v1474_v5  ;;  %v1648_v8 = vld [vmem:[#allocation2 + $0x7] ss:$0 sm:$0xff] }
 0x394   :  { %v2110_v50 = vsub.f32 %v1476_v27, %v1648_v8 }
 0x395   :  { %v1178_v19 = vpop.permute.xlu0 %1177 }
 0x3a7   :  { %s2093_s20 = spop %1779 }
 0x3a8   :  { %s1782_s21 = spop %1781  ;;  %s261_s9 = smul.f32 0.015625, %s2093_s20 }
 0x3a9   :  { %v392_v28 = vstv %s1782_s21  ;;  %s1784_s22 = spop %1783 }
 0x3aa   :  { %v394_v33 = vadd.f32 %v392_v28, %v389_v58  ;;  %v419_v34 = vstv %s1784_s22  ;;  %s1786_s23 = spop %1785  ;;  %s1544_s12 = smul.f32 25.0, %s261_s9 }
 0x3ab   :  { %v421_v40 = vadd.f32 %v419_v34, %v416_v26  ;;  %v548_v43 = vstv %s1786_s23  ;;  %s1788_s24 = spop %1787 }
 0x3ac   :  { %v400_v47 = vmul.f32 %v2046_v10, %v394_v33  ;;  %v550_v48 = vadd.f32 %v548_v43, %v545_v53  ;;  %v575_v49 = vstv %s1788_s24  ;;  %s1790_s25 = spop %1789  ;;  %v1583_v10 = vld [vmem:[#allocation2 + $0x11] ss:$0 sm:$0xff]  ;;  %v1205_v33 = vpop.permute.xlu1 %1204  ;;  %v1616_v43 = vld [vmem:[#allocation2 + $0x14] ss:$0 sm:$0xff] }
 0x3ad   :  { %v427_v52 = vmul.f32 %v2048_v14, %v421_v40  ;;  %v577_v54 = vadd.f32 %v575_v49, %v572_v60  ;;  %v704_v55 = vstv %s1790_s25  ;;  %s1792_s26 = spop %1791 }
 0x3ae   :  { %v405_v56 = vmul.f32 %v1572_v51, %v400_v47  ;;  %v556_v58 = vmul.f32 %v2054_v24, %v550_v48  ;;  %v706_v59 = vadd.f32 %v704_v55, %v701_v4  ;;  %v731_v61 = vstv %s1792_s26  ;;  %s1794_s27 = spop %1793  ;;  %v1594_v24 = vld [vmem:[#allocation2 + $0x12] ss:$0 sm:$0xff]  ;;  %v1334_v55 = vpop.permute.xlu0 %1333 }
 0x3af   :  { %v432_v62 = vmul.f32 %v1574_v57, %v427_v52  ;;  %v583_v0 = vmul.f32 %v2052_v20, %v577_v54  ;;  %v733_v53 = vadd.f32 %v731_v61, %v728_v6  ;;  %v860_v1 = vstv %s1794_s27  ;;  %s1796_s28 = spop %1795  ;;  %v1618_v54 = vld [vmem:[#allocation2 + $0x1c] ss:$0 sm:$0xff] }
 0x3b0   :  { %v561_v2 = vmul.f32 %v1583_v10, %v556_v58  ;;  %v712_v14 = vmul.f32 %v2060_v38, %v706_v59  ;;  %v862_v60 = vadd.f32 %v860_v1, %v857_v16  ;;  %v887_v3 = vstv %s1796_s28  ;;  %s1798_s29 = spop %1797 }
 0x3b1   :  { %v433_v5 = vsub.f32 %v405_v56, %v432_v62  ;;  %v588_v7 = vmul.f32 %v1585_v63, %v583_v0  ;;  %v739_v4 = vmul.f32 %v2058_v36, %v733_v53  ;;  %v889_v11 = vadd.f32 %v887_v3, %v884_v17  ;;  %s1800_s30 = spop %1799 }
 0x3b2   :  { %v717_v12 = vmul.f32 %v1594_v24, %v712_v14  ;;  %v868_v20 = vmul.f32 %v2064_v42, %v862_v60  ;;  %v1016_v6 = vstv %s1798_s29  ;;  %v1043_v15 = vstv %s1800_s30  ;;  %s2118_s3 = spop %1801  ;;  %v1627_v14 = vld [vmem:[#allocation2 + $0x15] ss:$0 sm:$0xff] }
 0x3b3   :  { %v434_v38 = vand.u32 2147483647, %v433_v5  ;;  %v436_v16 = vmul.f32 0.5, %v433_v5  ;;  %v589_v21 = vsub.f32 %v561_v2, %v588_v7  ;;  %v744_v9 = vmul.f32 %v1596_v13, %v739_v4  ;;  %s2120_s4 = spop %1803  ;;  %v1361_v2 = vpop.permute.xlu1 %1360 }
 0x3b4   :  { %v873_v25 = vmul.f32 %v1605_v23, %v868_v20  ;;  %v895_v36 = vmul.f32 %v2062_v41, %v889_v11  ;;  %v1018_v17 = vadd.f32 %v1016_v6, %v1013_v35  ;;  %v1045_v26 = vadd.f32 %v1043_v15, %v2095_v18  ;;  %s2132_s5 = spop %1805  ;;  %v1490_v6 = vpop.permute.xlu0 %1489  ;;  %v1629_v15 = vld [vmem:[#allocation2 + $0x1d] ss:$0 sm:$0xff]  ;;  %v1651_v18 = vld [vmem:[#allocation2 + $0x1f] ss:$0 sm:$0xff] }
 0x3b5   :  { %vm2124_vm1 = vcmp.lt.f32.partialorder %v434_v38, 1.0  ;;  %v2128_v27 = vmul.f32 %v436_v16, %v433_v5  ;;  %v2130_v28 = vadd.f32 -0.5, %v434_v38  ;;  %v590_v31 = vand.u32 2147483647, %v589_v21  ;;  %s2141_s6 = spop %1807 }
 0x3b6   :  { %v592_v34 = vmul.f32 0.5, %v589_v21  ;;  %v745_v39 = vsub.f32 %v717_v12, %v744_v9  ;;  %v900_v41 = vmul.f32 %v1607_v32, %v895_v36  ;;  %v1024_v35 = vmul.f32 %v2068_v46, %v1018_v17  ;;  %s1810_s7 = spop %1809  ;;  %v1638_v9 = vld [vmem:[#allocation2 + $0x16] ss:$0 sm:$0xff]  ;;  %v1649_v36 = vld [vmem:[#allocation2 + $0x17] ss:$0 sm:$0xff] }
 0x3b7   :  { %vm2135_vm2 = vcmp.lt.f32.partialorder %v590_v31, 1.0  ;;  %v1586_v40 = vadd.f32 -0.5, %v590_v31  ;;  %v1051_v8 = vmul.f32 %v2066_v45, %v1045_v26  ;;  %v1172_v47 = vstv %s2118_s3  ;;  %s1812_s8 = spop %1811  ;;  %v1517_v42 = vpop.permute.xlu1 %1516 }
 0x3b8   :  { %v593_v48 = vmul.f32 %v592_v34, %v589_v21  ;;  %v746_v49 = vand.u32 2147483647, %v745_v39  ;;  %v748_v51 = vmul.f32 0.5, %v745_v39  ;;  %v901_v52 = vsub.f32 %v873_v25, %v900_v41 }
 0x3b9   :  { %v1029_v56 = vmul.f32 %v1616_v43, %v1024_v35  ;;  %v1056_v46 = vmul.f32 %v1618_v54, %v1051_v8  ;;  %v1174_v57 = vadd.f32 %v1172_v47, %v2105_v37  ;;  %v1199_v58 = vstv %s2120_s4 }
 0x3ba   :  { %vm2145_vm4 = vcmp.lt.f32.partialorder %v746_v49, 1.0  ;;  %v749_v45 = vmul.f32 %v748_v51, %v745_v39  ;;  %v1597_v61 = vadd.f32 -0.5, %v746_v49  ;;  %v902_v62 = vand.u32 2147483647, %v901_v52 }
 0x3bb   :  { %v904_v10 = vmul.f32 0.5, %v901_v52  ;;  %v1057_v0 = vsub.f32 %v1029_v56, %v1056_v46  ;;  %v1180_v53 = vmul.f32 %v1178_v19, %v1174_v57  ;;  %v1201_v1 = vadd.f32 %v1199_v58, %v2098_v22 }
 0x3bc   :  { %v1608_v63 = vadd.f32 -0.5, %v902_v62  ;;  %v1328_v60 = vstv %s2132_s5  ;;  %v1355_v3 = vstv %s2141_s6  ;;  %v1484_v37 = vstv %s1810_s7 }
 0x3bd   :  { %v905_v5 = vmul.f32 %v904_v10, %v901_v52  ;;  %v1058_v7 = vand.u32 2147483647, %v1057_v0  ;;  %v1060_v24 = vmul.f32 0.5, %v1057_v0  ;;  %v1185_v4 = vmul.f32 %v1627_v14, %v1180_v53 }
 0x3be   :  { %v1207_v11 = vmul.f32 %v1205_v33, %v1201_v1  ;;  %v1330_v12 = vadd.f32 %v1328_v60, %v2107_v44  ;;  %v1357_v13 = vadd.f32 %v1355_v3, %v2101_v29  ;;  %v1486_v20 = vadd.f32 %v1484_v37, %v2110_v50  ;;  %v1640_v29 = vld [vmem:[#allocation2 + $0x1e] ss:$0 sm:$0xff] }
 0x3bf   :  { %v1061_v22 = vmul.f32 %v1060_v24, %v1057_v0  ;;  %v1511_v19 = vstv %s1812_s8  ;;  %v439_v38 = vsel %vm2124_vm1, %v2128_v27, %v2130_v28  ;;  %v595_v16 = vsel %vm2135_vm2, %v593_v48, %v1586_v40 }
 0x3c0   :  { %v1212_v21 = vmul.f32 %v1629_v15, %v1207_v11  ;;  %v1336_v23 = vmul.f32 %v1334_v55, %v1330_v12  ;;  %v1363_v44 = vmul.f32 %v1361_v2, %v1357_v13  ;;  %v1492_v25 = vmul.f32 %v1490_v6, %v1486_v20 }
 0x3c1   :  { %v1513_v50 = vadd.f32 %v1511_v19, %v2103_v30  ;;  %v596_v17 = vadd.f32 %v595_v16, %v439_v38  ;;  %v751_v26 = vsel %vm2145_vm4, %v749_v45, %v1597_v61  ;;  %vm2164_vm5 = vcmp.lt.f32.partialorder %v902_v62, 1.0 }
 0x3c2   :  { %v1213_v27 = vsub.f32 %v1185_v4, %v1212_v21  ;;  %v1341_v28 = vmul.f32 %v1638_v9, %v1336_v23  ;;  %v1368_v32 = vmul.f32 %v1640_v29, %v1363_v44  ;;  %v1497_v33 = vmul.f32 %v1649_v36, %v1492_v25 }
 0x3c3   :  { %v1519_v34 = vmul.f32 %v1517_v42, %v1513_v50  ;;  %v752_v39 = vadd.f32 %v751_v26, %v596_v17  ;;  %v907_v41 = vsel %vm2164_vm5, %v905_v5, %v1608_v63  ;;  %vm1059_vm6 = vcmp.lt.f32.partialorder %v1058_v7, 1.0 }
 0x3c4   :  { %v1216_v30 = vmul.f32 0.5, %v1213_v27  ;;  %v1369_v35 = vsub.f32 %v1341_v28, %v1368_v32  ;;  %v1619_v40 = vadd.f32 -0.5, %v1058_v7  ;;  %v1214_v43 = vand.u32 2147483647, %v1213_v27 }
 0x3c5   :  { %v1524_v8 = vmul.f32 %v1651_v18, %v1519_v34  ;;  %v908_v47 = vadd.f32 %v907_v41, %v752_v39 }
 0x3c6   :  { %v1063_v48 = vsel %vm1059_vm6, %v1061_v22, %v1619_v40  ;;  %vm1215_vm7 = vcmp.lt.f32.partialorder %v1214_v43, 1.0  ;;  %v1217_v49 = vmul.f32 %v1216_v30, %v1213_v27  ;;  %v1630_v51 = vadd.f32 -0.5, %v1214_v43 }
 0x3c7   :  { %v1525_v52 = vsub.f32 %v1497_v33, %v1524_v8  ;;  %v1064_v54 = vadd.f32 %v1063_v48, %v908_v47  ;;  %v1370_v55 = vand.u32 2147483647, %v1369_v35  ;;  %v1372_v56 = vmul.f32 0.5, %v1369_v35 }
 0x3c8   :  { %v1219_v46 = vsel %vm1215_vm7, %v1217_v49, %v1630_v51 }
 0x3c9   :  { %v1220_v57 = vadd.f32 %v1219_v46, %v1064_v54  ;;  %vm1371_vm8 = vcmp.lt.f32.partialorder %v1370_v55, 1.0  ;;  %v1373_v58 = vmul.f32 %v1372_v56, %v1369_v35  ;;  %v1641_v59 = vadd.f32 -0.5, %v1370_v55 }
 0x3ca   :  { %v1526_v45 = vand.u32 2147483647, %v1525_v52  ;;  %v1528_v61 = vmul.f32 0.5, %v1525_v52 }
 0x3cb   :  { %v1375_v62 = vsel %vm1371_vm8, %v1373_v58, %v1641_v59 }
 0x3cc   :  { %v1376_v10 = vadd.f32 %v1375_v62, %v1220_v57  ;;  %vm1527_vm9 = vcmp.lt.f32.partialorder %v1526_v45, 1.0  ;;  %v1529_v0 = vmul.f32 %v1528_v61, %v1525_v52  ;;  %v1652_v53 = vadd.f32 -0.5, %v1526_v45 }
 0x3ce   :  { %v1531_v1 = vsel %vm1527_vm9, %v1529_v0, %v1652_v53 }
 0x3cf   :  { %v1532_v2 = vadd.f32 %v1531_v1, %v1376_v10 }
 0x3d1   :  { %v1533_v63 = vsel %vm160_vm3, %v1532_v2, 0.0 }
 0x3d2   :  { %1534 = vadd.xlane.f32.xlu0 %v1533_v63 }
 0x45f   :  { %v1535_v14 = vpop.xlane.xlu0 %1534 }
 0x460   :  { %v1536_v60 = vrot.slane %v1535_v14, 4 }
 0x462   :  { %v1537_v3 = vadd.f32 %v1536_v60, %v1535_v14 }
 0x464   :  { %v1538_v37 = vrot.slane %v1537_v3, 2 }
 0x466   :  { %v1539_v5 = vadd.f32 %v1538_v37, %v1537_v3 }
 0x468   :  { %v1540_v7 = vrot.slane %v1539_v5, 1 }
 0x46a   :  { %v1541_v24 = vadd.f32 %v1540_v7, %v1539_v5 }
 0x46c   :  { %1813 = vpush %v1541_v24 }
 0x49d   :  { %s1814_s10 = spop %1813 }
 0x49e   :  { %s1543_s11 = smul.f32 0.001953125, %s1814_s10 }
 0x4a0   :  { %s1545_s0 = smul.f32 50.0, %s1543_s11 }
 0x4a2   :  { %s1546_s14 = sadd.f32 %s1545_s0, %s1544_s12 }
 0x4a4   :  { %v1547_v4 = vstv %s1546_s14 }
 0x4a5   :  { %1549 = vst.msk [vmem:[#allocation5] sm:$0x1] %vm1548_vm10, %v1547_v4 }
 0x4a6   :  { %1846 = shalt.err (!%p1843_p4)
}
 0x4a7   :  { %s1847_s19 = scalar_lea.hbm %s2186_s2, 16 }
 0x4a8   :  { %p1848_p5 = scmp.ne.s32.totalorder %s2186_s2, %s1847_s19  ;;  %p1851_p6 = scmp.lt.u32.totalorder %s1847_s19, %s2186_s2 }
 0x4aa   :  { %p1853_p7 = pnand %p1851_p6, %p1848_p5 }
 0x4ac   :  { %1856 = shalt.err (!%p1853_p7)
}
 0x4ad   :  { %1559 = dma.vmem_to_hbm [thread:$0]  %s1557_s13, 16, %s2186_s2, [#allocation6]  }
 0x4ae   :  { %1857 = dma.done.wait [#allocation6], 16  }
 0x4af   :  { %1858 = vsyncadd [#allocation6], 4294967280 }
 0x4b0   :  { %1563 = vsyncpa [#allocation6], 1 }

</bundles_post_ra>
